<compile_context>
chip_gen: v5e
topology: v5e:2x2
jax: 0.10.0
libtpu: 0.0.40
codegen_flags: <defaults>
</compile_context>

<pallas_src>
import jax
import jax.numpy as jnp
from jax.experimental import pallas as pl
from jax.experimental.pallas import tpu as pltpu

BN_EPS = 1e-5
H = W = 4
HW = H * W                 # 16
C_CONV1 = 20
C_CONV2 = 50
C_PAD = 64                 # conv2 out channels padded 50 -> 64 (zero pad)
FEAT = HW * C_CONV2        # 800 (= 4*4*50), logical fc1 fan-in
HIDDEN = 500
N_CLASSES = 10


# ---------------------------------------------------------------------------
# Single fused kernel.
# ---------------------------------------------------------------------------
def fused_kernel(x_ref, w1_ref, b1_ref, g_ref, beta_ref, w2_ref, b2_ref,
                 bf1_ref, wf2_ref, bf2_ref, wf1_hbm,
                 o_ref,
                 wf1_vmem, sem):
    n_batch = o_ref.shape[0]

    # ----- kick off the big fc1-weight DMA first; it overlaps conv1/BN/conv2. -----
    wf1_copy = pltpu.make_async_copy(wf1_hbm, wf1_vmem, sem)
    wf1_copy.start()

    # ----- conv1: 1 -> 20 channels (K == 1 => broadcast FMA on the VPU). -----
    x = x_ref[...]                                           # (P, 1), P = HW*N, row = p*N + n
    h1 = x * w1_ref[...] + b1_ref[...]                       # (P, 20)

    # ----- BatchNorm2d (training-mode batch stats over N,H,W == the row axis). -----
    # Single-pass variance (E[x^2] - mean^2), normalize+affine folded into one FMA.
    mean = jnp.mean(h1, axis=0, keepdims=True)               # (1, 20)
    var = jnp.maximum(jnp.mean(h1 * h1, axis=0, keepdims=True) - mean * mean, 0.0)
    scale = g_ref[...] * jax.lax.rsqrt(var + BN_EPS)
    shift = beta_ref[...] - mean * scale
    h1 = jnp.maximum(h1 * scale + shift, 0.0)                # relu, (P, 20)

    # ----- conv2: 20 -> 64 (50 real + 14 zero-padded) channels, per-pixel matmul. -----
    h2 = jnp.dot(h1, w2_ref[...], preferred_element_type=jnp.float32) + b2_ref[...]
    h2 = jnp.maximum(h2, 0.0)                                # (P, 64) f32
    h2b = h2.astype(jnp.bfloat16)                            # MXU-native input dtype

    # ----- fc1 as a 16-step accumulated matmul (replaces flatten + big K=800 dot). ----
    # z1[n, j] = sum_p sum_c h2[p*N + n, c] * w_fc1[p, c, j]  (padded c-rows are zero).
    wf1_copy.wait()                                          # DMA must be done before use
    acc = jnp.zeros((n_batch, HIDDEN), jnp.float32)
    for p in range(HW):                                      # static, unrolled (16 dots)
        lhs = h2b[p * n_batch:(p + 1) * n_batch, :]          # contiguous (N, 64) row block
        acc = acc + jnp.dot(lhs, wf1_vmem[p],                # (64, 500) bf16 block
                            preferred_element_type=jnp.float32)
    z1 = jnp.maximum(acc + bf1_ref[...], 0.0)                # (N, 500)

    # ----- fc2 + numerically-stable log_softmax(dim=1). -----
    z2 = jnp.dot(z1.astype(jnp.bfloat16), wf2_ref[...],
                 preferred_element_type=jnp.float32) + bf2_ref[...]
    m = jnp.max(z2, axis=1, keepdims=True)
    s = z2 - m
    lse = jnp.log(jnp.sum(jnp.exp(s), axis=1, keepdims=True))
    o_ref[...] = s - lse                                     # (N, 10) log-probs


def _vmem():
    return pl.BlockSpec(memory_space=pltpu.MemorySpace.VMEM)


def mock_model_fused(x_pix, params, n_batch):
    # NOTE: single grid-less call — BN batch statistics need the whole (N,H,W) pixel set
    # in one block. For large batches, tile rows (multiple of 8), add a two-pass
    # cross-tile BN reduction, and a leading "parallel" grid axis (dual-TC on v7x);
    # size the row tile against the per-chip scoped-VMEM budget.
    return pl.pallas_call(
        fused_kernel,
        out_shape=jax.ShapeDtypeStruct((n_batch, N_CLASSES), jnp.float32),
        in_specs=[_vmem()] * 10 + [pl.BlockSpec(memory_space=pl.ANY)],   # w_fc1 stays in HBM
        out_specs=_vmem(),
        scratch_shapes=[
            pltpu.VMEM((HW, C_PAD, HIDDEN), jnp.bfloat16),   # w_fc1 landing buffer (~1 MB)
            pltpu.SemaphoreType.DMA(()),                     # its DMA-completion semaphore
        ],
    )(x_pix,
      params["w_conv1"], params["b_conv1"],
      params["bn_gamma"], params["bn_beta"],
      params["w_conv2"], params["b_conv2"],
      params["b_fc1"], params["w_fc2"], params["b_fc2"],
      params["w_fc1"])


# ---------------------------------------------------------------------------
# Parameter init (deterministic, PyTorch-default-style uniform(-1/sqrt(fan_in), .)).
# ---------------------------------------------------------------------------
def init_params(key):
    ks = jax.random.split(key, 8)

    def u(k, shape, fan_in):
        bound = 1.0 / float(fan_in) ** 0.5
        return jax.random.uniform(k, shape, jnp.float32, -bound, bound)

    # conv2 weight/bias zero-padded on the output-channel axis 50 -> 64.
    w_conv2 = jnp.zeros((C_CONV1, C_PAD), jnp.float32).at[:, :C_CONV2].set(
        u(ks[2], (C_CONV1, C_CONV2), C_CONV1))
    b_conv2 = jnp.zeros((1, C_PAD), jnp.float32).at[:, :C_CONV2].set(
        u(ks[3], (1, C_CONV2), C_CONV1))

    # fc1 weight stored as 16 per-pixel blocks (HW, C_PAD, HIDDEN), bf16, zero-padded
    # on the channel axis. This folds torch's view(-1, 4*4*50) ((c,h,w) order) into the
    # weight layout. To load real torch weights:
    #   w_fc1[p, c, :] = fc1.weight[:, c*16 + p]   for c < 50, else 0   (p = h*4 + w)
    w_fc1 = jnp.zeros((HW, C_PAD, HIDDEN), jnp.float32).at[:, :C_CONV2, :].set(
        u(ks[4], (HW, C_CONV2, HIDDEN), FEAT))

    return dict(
        w_conv1=u(ks[0], (1, C_CONV1), 1),                 # (Cin, Cout) for the 1x1 conv
        b_conv1=u(ks[1], (1, C_CONV1), 1),
        bn_gamma=jnp.ones((1, C_CONV1), jnp.float32),      # BatchNorm2d default weight
        bn_beta=jnp.zeros((1, C_CONV1), jnp.float32),      # BatchNorm2d default bias
        w_conv2=w_conv2,
        b_conv2=b_conv2,
        w_fc1=w_fc1.astype(jnp.bfloat16),                  # bf16: halves the dominant DMA
        b_fc1=u(ks[5], (1, HIDDEN), FEAT),
        w_fc2=u(ks[6], (HIDDEN, N_CLASSES), HIDDEN).astype(jnp.bfloat16),
        b_fc2=u(ks[7], (1, N_CLASSES), HIDDEN),
        # TODO(synk): nn.Embedding(10, 10) is declared in __init__ but never used in forward.
    )


# ---------------------------------------------------------------------------
# Forward: only a (tiny) reshape/transpose of the input in plain JAX;
# all compute happens inside the single Pallas kernel.
# ---------------------------------------------------------------------------
@jax.jit
def mock_model_forward(params, x):
    # x: NCHW (N, 1, 4, 4). Cin == 1, so pixels-as-rows is a cheap reshape; rows are
    # ordered row = p*N + n so per-pixel fc1 blocks are contiguous row slices in-kernel.
    n, c, h, w = x.shape
    x_pix = x.reshape(n, h * w).transpose(1, 0).reshape(h * w * n, 1)   # (P, 1)
    return mock_model_fused(x_pix, params, n)                           # (N, 10) log-probs


# Pure-JAX reference (same weight layout / bf16 weights) for a numerical smoke test.
def reference_forward(params, x):
    n = x.shape[0]
    x_pix = x.reshape(n, HW).transpose(1, 0).reshape(HW * n, 1)
    h1 = x_pix * params["w_conv1"] + params["b_conv1"]
    mean = jnp.mean(h1, axis=0, keepdims=True)
    var = jnp.mean((h1 - mean) ** 2, axis=0, keepdims=True)
    h1 = jnp.maximum(params["bn_gamma"] * (h1 - mean) / jnp.sqrt(var + BN_EPS)
                     + params["bn_beta"], 0.0)
    h2 = jnp.maximum(h1 @ params["w_conv2"] + params["b_conv2"], 0.0)
    wf1 = params["w_fc1"].astype(jnp.float32)
    z1 = jnp.zeros((n, HIDDEN), jnp.float32)
    for p in range(HW):
        z1 = z1 + h2[p * n:(p + 1) * n] @ wf1[p]
    z1 = jnp.maximum(z1 + params["b_fc1"], 0.0)
    z2 = z1 @ params["w_fc2"].astype(jnp.float32) + params["b_fc2"]
    return jax.nn.log_softmax(z2, axis=1)


if __name__ == "__main__":
    key = jax.random.PRNGKey(0)
    pkey, xkey = jax.random.split(key)
    params = init_params(pkey)

    # Input must be (N, 1, 4, 4) so that view(-1, 4*4*50) in the original forward is valid.
    x = jax.random.normal(xkey, (2, 1, H, W), jnp.float32)

    out = mock_model_forward(params, x)
    out = jax.block_until_ready(out)

    assert out.shape == (2, N_CLASSES)
    # log_softmax rows must sum (in prob space) to ~1
    assert jnp.allclose(jnp.sum(jnp.exp(out), axis=1), 1.0, atol=1e-3)
    # match the pure-JAX reference (loose tol: bf16 MXU inputs vs f32 reference math)
    ref = reference_forward(params, x)
    assert jnp.allclose(out, ref, atol=5e-2), (out, ref)

    print("KERNEL_OK")
</pallas_src>

<mosaic_0001>
module attributes {stable_mosaic.version = 11 : i64} {
  func.func @fused_kernel(%arg0: memref<32x1xf32, #tpu.memory_space<vmem>>, %arg1: memref<1x20xf32, #tpu.memory_space<vmem>>, %arg2: memref<1x20xf32, #tpu.memory_space<vmem>>, %arg3: memref<1x20xf32, #tpu.memory_space<vmem>>, %arg4: memref<1x20xf32, #tpu.memory_space<vmem>>, %arg5: memref<20x64xf32, #tpu.memory_space<vmem>>, %arg6: memref<1x64xf32, #tpu.memory_space<vmem>>, %arg7: memref<1x500xf32, #tpu.memory_space<vmem>>, %arg8: memref<500x10xbf16, #tpu.memory_space<vmem>>, %arg9: memref<1x10xf32, #tpu.memory_space<vmem>>, %arg10: memref<16x64x500xbf16, #tpu.memory_space<any>>, %arg11: memref<2x10xf32, #tpu.memory_space<vmem>>, %arg12: memref<16x64x500xbf16, #tpu.memory_space<vmem>>, %arg13: memref<!tpu.dma_semaphore, #tpu.memory_space<semaphore_mem>>) attributes {dimension_semantics = [], scalar_prefetch = 0 : i64, scratch_operands = 2 : i64, tpu.core_type = #tpu.core_type<tc>} {
    tpu.enqueue_dma source(%arg10 : memref<16x64x500xbf16, #tpu.memory_space<any>>) target(%arg12 : memref<16x64x500xbf16, #tpu.memory_space<vmem>>) target_semaphore(%arg13 : memref<!tpu.dma_semaphore, #tpu.memory_space<semaphore_mem>>)
    %c0 = arith.constant 0 : index
    %c0_0 = arith.constant 0 : index
    %0 = vector.load %arg0[%c0, %c0_0] : memref<32x1xf32, #tpu.memory_space<vmem>>, vector<32x1xf32>
    %c0_1 = arith.constant 0 : index
    %c0_2 = arith.constant 0 : index
    %1 = vector.load %arg1[%c0_1, %c0_2] : memref<1x20xf32, #tpu.memory_space<vmem>>, vector<1x20xf32>
    %2 = vector.broadcast %0 : vector<32x1xf32> to vector<32x20xf32>
    %3 = vector.broadcast %1 : vector<1x20xf32> to vector<32x20xf32>
    %4 = arith.mulf %2, %3 : vector<32x20xf32>
    %c0_3 = arith.constant 0 : index
    %c0_4 = arith.constant 0 : index
    %5 = vector.load %arg2[%c0_3, %c0_4] : memref<1x20xf32, #tpu.memory_space<vmem>>, vector<1x20xf32>
    %6 = vector.broadcast %5 : vector<1x20xf32> to vector<32x20xf32>
    %7 = arith.addf %4, %6 : vector<32x20xf32>
    %cst = arith.constant dense<0.000000e+00> : vector<20xf32>
    %8 = vector.multi_reduction <add>, %7, %cst [0] : vector<32x20xf32> to vector<20xf32>
    %9 = vector.shape_cast %8 : vector<20xf32> to vector<1x20xf32>
    %cst_5 = arith.constant 3.200000e+01 : f32
    %10 = vector.broadcast %cst_5 : f32 to vector<1x20xf32>
    %11 = arith.divf %9, %10 : vector<1x20xf32>
    %12 = arith.mulf %7, %7 : vector<32x20xf32>
    %cst_6 = arith.constant dense<0.000000e+00> : vector<20xf32>
    %13 = vector.multi_reduction <add>, %12, %cst_6 [0] : vector<32x20xf32> to vector<20xf32>
    %14 = vector.shape_cast %13 : vector<20xf32> to vector<1x20xf32>
    %cst_7 = arith.constant 3.200000e+01 : f32
    %15 = vector.broadcast %cst_7 : f32 to vector<1x20xf32>
    %16 = arith.divf %14, %15 : vector<1x20xf32>
    %17 = arith.mulf %11, %11 : vector<1x20xf32>
    %18 = arith.subf %16, %17 : vector<1x20xf32>
    %cst_8 = arith.constant 0.000000e+00 : f32
    %19 = vector.broadcast %cst_8 : f32 to vector<1x20xf32>
    %20 = arith.maximumf %18, %19 : vector<1x20xf32>
    %c0_9 = arith.constant 0 : index
    %c0_10 = arith.constant 0 : index
    %21 = vector.load %arg3[%c0_9, %c0_10] : memref<1x20xf32, #tpu.memory_space<vmem>>, vector<1x20xf32>
    %cst_11 = arith.constant 9.99999974E-6 : f32
    %22 = vector.broadcast %cst_11 : f32 to vector<1x20xf32>
    %23 = arith.addf %20, %22 : vector<1x20xf32>
    %24 = math.rsqrt %23 : vector<1x20xf32>
    %25 = arith.mulf %21, %24 : vector<1x20xf32>
    %c0_12 = arith.constant 0 : index
    %c0_13 = arith.constant 0 : index
    %26 = vector.load %arg4[%c0_12, %c0_13] : memref<1x20xf32, #tpu.memory_space<vmem>>, vector<1x20xf32>
    %27 = arith.mulf %11, %25 : vector<1x20xf32>
    %28 = arith.subf %26, %27 : vector<1x20xf32>
    %29 = vector.broadcast %25 : vector<1x20xf32> to vector<32x20xf32>
    %30 = arith.mulf %7, %29 : vector<32x20xf32>
    %31 = vector.broadcast %28 : vector<1x20xf32> to vector<32x20xf32>
    %32 = arith.addf %30, %31 : vector<32x20xf32>
    %cst_14 = arith.constant 0.000000e+00 : f32
    %33 = vector.broadcast %cst_14 : f32 to vector<32x20xf32>
    %34 = arith.maximumf %32, %33 : vector<32x20xf32>
    %c0_15 = arith.constant 0 : index
    %c0_16 = arith.constant 0 : index
    %35 = vector.load %arg5[%c0_15, %c0_16] : memref<20x64xf32, #tpu.memory_space<vmem>>, vector<20x64xf32>
    %cst_17 = arith.constant dense<0.000000e+00> : vector<32x64xf32>
    %36 = tpu.matmul %34, %35, %cst_17 {dimension_numbers = #tpu.dot_dimension_numbers<[1], [0], [0], [1], [0, 0, 1, 1], [], []>} : vector<32x20xf32>, vector<20x64xf32>, vector<32x64xf32> -> vector<32x64xf32>
    %c0_18 = arith.constant 0 : index
    %c0_19 = arith.constant 0 : index
    %37 = vector.load %arg6[%c0_18, %c0_19] : memref<1x64xf32, #tpu.memory_space<vmem>>, vector<1x64xf32>
    %38 = vector.broadcast %37 : vector<1x64xf32> to vector<32x64xf32>
    %39 = arith.addf %36, %38 : vector<32x64xf32>
    %cst_20 = arith.constant 0.000000e+00 : f32
    %40 = vector.broadcast %cst_20 : f32 to vector<32x64xf32>
    %41 = arith.maximumf %39, %40 : vector<32x64xf32>
    %42 = arith.truncf %41 : vector<32x64xf32> to vector<32x64xbf16>
    tpu.wait_dma2 semaphore(%arg13 : memref<!tpu.dma_semaphore, #tpu.memory_space<semaphore_mem>>) src(%arg10 : memref<16x64x500xbf16, #tpu.memory_space<any>>) dst(%arg12 : memref<16x64x500xbf16, #tpu.memory_space<vmem>>)
    %cst_21 = arith.constant 0.000000e+00 : f32
    %43 = vector.broadcast %cst_21 : f32 to vector<2x500xf32>
    %44 = vector.extract_strided_slice %42 {offsets = [0, 0], sizes = [2, 64], strides = [1, 1]} : vector<32x64xbf16> to vector<2x64xbf16>
    %c0_22 = arith.constant 0 : index
    %c0_23 = arith.constant 0 : index
    %c0_24 = arith.constant 0 : index
    %45 = vector.load %arg12[%c0_22, %c0_23, %c0_24] : memref<16x64x500xbf16, #tpu.memory_space<vmem>>, vector<1x64x500xbf16>
    %46 = vector.shape_cast %45 : vector<1x64x500xbf16> to vector<64x500xbf16>
    %cst_25 = arith.constant dense<0.000000e+00> : vector<2x500xf32>
    %47 = tpu.matmul %44, %46, %cst_25 {dimension_numbers = #tpu.dot_dimension_numbers<[1], [0], [0], [1], [0, 0, 1, 1], [], []>} : vector<2x64xbf16>, vector<64x500xbf16>, vector<2x500xf32> -> vector<2x500xf32>
    %48 = arith.addf %43, %47 : vector<2x500xf32>
    %49 = vector.extract_strided_slice %42 {offsets = [2, 0], sizes = [2, 64], strides = [1, 1]} : vector<32x64xbf16> to vector<2x64xbf16>
    %c1 = arith.constant 1 : index
    %c0_26 = arith.constant 0 : index
    %c0_27 = arith.constant 0 : index
    %50 = vector.load %arg12[%c1, %c0_26, %c0_27] : memref<16x64x500xbf16, #tpu.memory_space<vmem>>, vector<1x64x500xbf16>
    %51 = vector.shape_cast %50 : vector<1x64x500xbf16> to vector<64x500xbf16>
    %cst_28 = arith.constant dense<0.000000e+00> : vector<2x500xf32>
    %52 = tpu.matmul %49, %51, %cst_28 {dimension_numbers = #tpu.dot_dimension_numbers<[1], [0], [0], [1], [0, 0, 1, 1], [], []>} : vector<2x64xbf16>, vector<64x500xbf16>, vector<2x500xf32> -> vector<2x500xf32>
    %53 = arith.addf %48, %52 : vector<2x500xf32>
    %54 = vector.extract_strided_slice %42 {offsets = [4, 0], sizes = [2, 64], strides = [1, 1]} : vector<32x64xbf16> to vector<2x64xbf16>
    %c2 = arith.constant 2 : index
    %c0_29 = arith.constant 0 : index
    %c0_30 = arith.constant 0 : index
    %55 = vector.load %arg12[%c2, %c0_29, %c0_30] : memref<16x64x500xbf16, #tpu.memory_space<vmem>>, vector<1x64x500xbf16>
    %56 = vector.shape_cast %55 : vector<1x64x500xbf16> to vector<64x500xbf16>
    %cst_31 = arith.constant dense<0.000000e+00> : vector<2x500xf32>
    %57 = tpu.matmul %54, %56, %cst_31 {dimension_numbers = #tpu.dot_dimension_numbers<[1], [0], [0], [1], [0, 0, 1, 1], [], []>} : vector<2x64xbf16>, vector<64x500xbf16>, vector<2x500xf32> -> vector<2x500xf32>
    %58 = arith.addf %53, %57 : vector<2x500xf32>
    %59 = vector.extract_strided_slice %42 {offsets = [6, 0], sizes = [2, 64], strides = [1, 1]} : vector<32x64xbf16> to vector<2x64xbf16>
    %c3 = arith.constant 3 : index
    %c0_32 = arith.constant 0 : index
    %c0_33 = arith.constant 0 : index
    %60 = vector.load %arg12[%c3, %c0_32, %c0_33] : memref<16x64x500xbf16, #tpu.memory_space<vmem>>, vector<1x64x500xbf16>
    %61 = vector.shape_cast %60 : vector<1x64x500xbf16> to vector<64x500xbf16>
    %cst_34 = arith.constant dense<0.000000e+00> : vector<2x500xf32>
    %62 = tpu.matmul %59, %61, %cst_34 {dimension_numbers = #tpu.dot_dimension_numbers<[1], [0], [0], [1], [0, 0, 1, 1], [], []>} : vector<2x64xbf16>, vector<64x500xbf16>, vector<2x500xf32> -> vector<2x500xf32>
    %63 = arith.addf %58, %62 : vector<2x500xf32>
    %64 = vector.extract_strided_slice %42 {offsets = [8, 0], sizes = [2, 64], strides = [1, 1]} : vector<32x64xbf16> to vector<2x64xbf16>
    %c4 = arith.constant 4 : index
    %c0_35 = arith.constant 0 : index
    %c0_36 = arith.constant 0 : index
    %65 = vector.load %arg12[%c4, %c0_35, %c0_36] : memref<16x64x500xbf16, #tpu.memory_space<vmem>>, vector<1x64x500xbf16>
    %66 = vector.shape_cast %65 : vector<1x64x500xbf16> to vector<64x500xbf16>
    %cst_37 = arith.constant dense<0.000000e+00> : vector<2x500xf32>
    %67 = tpu.matmul %64, %66, %cst_37 {dimension_numbers = #tpu.dot_dimension_numbers<[1], [0], [0], [1], [0, 0, 1, 1], [], []>} : vector<2x64xbf16>, vector<64x500xbf16>, vector<2x500xf32> -> vector<2x500xf32>
    %68 = arith.addf %63, %67 : vector<2x500xf32>
    %69 = vector.extract_strided_slice %42 {offsets = [10, 0], sizes = [2, 64], strides = [1, 1]} : vector<32x64xbf16> to vector<2x64xbf16>
    %c5 = arith.constant 5 : index
    %c0_38 = arith.constant 0 : index
    %c0_39 = arith.constant 0 : index
    %70 = vector.load %arg12[%c5, %c0_38, %c0_39] : memref<16x64x500xbf16, #tpu.memory_space<vmem>>, vector<1x64x500xbf16>
    %71 = vector.shape_cast %70 : vector<1x64x500xbf16> to vector<64x500xbf16>
    %cst_40 = arith.constant dense<0.000000e+00> : vector<2x500xf32>
    %72 = tpu.matmul %69, %71, %cst_40 {dimension_numbers = #tpu.dot_dimension_numbers<[1], [0], [0], [1], [0, 0, 1, 1], [], []>} : vector<2x64xbf16>, vector<64x500xbf16>, vector<2x500xf32> -> vector<2x500xf32>
    %73 = arith.addf %68, %72 : vector<2x500xf32>
    %74 = vector.extract_strided_slice %42 {offsets = [12, 0], sizes = [2, 64], strides = [1, 1]} : vector<32x64xbf16> to vector<2x64xbf16>
    %c6 = arith.constant 6 : index
    %c0_41 = arith.constant 0 : index
    %c0_42 = arith.constant 0 : index
    %75 = vector.load %arg12[%c6, %c0_41, %c0_42] : memref<16x64x500xbf16, #tpu.memory_space<vmem>>, vector<1x64x500xbf16>
    %76 = vector.shape_cast %75 : vector<1x64x500xbf16> to vector<64x500xbf16>
    %cst_43 = arith.constant dense<0.000000e+00> : vector<2x500xf32>
    %77 = tpu.matmul %74, %76, %cst_43 {dimension_numbers = #tpu.dot_dimension_numbers<[1], [0], [0], [1], [0, 0, 1, 1], [], []>} : vector<2x64xbf16>, vector<64x500xbf16>, vector<2x500xf32> -> vector<2x500xf32>
    %78 = arith.addf %73, %77 : vector<2x500xf32>
    %79 = vector.extract_strided_slice %42 {offsets = [14, 0], sizes = [2, 64], strides = [1, 1]} : vector<32x64xbf16> to vector<2x64xbf16>
    %c7 = arith.constant 7 : index
    %c0_44 = arith.constant 0 : index
    %c0_45 = arith.constant 0 : index
    %80 = vector.load %arg12[%c7, %c0_44, %c0_45] : memref<16x64x500xbf16, #tpu.memory_space<vmem>>, vector<1x64x500xbf16>
    %81 = vector.shape_cast %80 : vector<1x64x500xbf16> to vector<64x500xbf16>
    %cst_46 = arith.constant dense<0.000000e+00> : vector<2x500xf32>
    %82 = tpu.matmul %79, %81, %cst_46 {dimension_numbers = #tpu.dot_dimension_numbers<[1], [0], [0], [1], [0, 0, 1, 1], [], []>} : vector<2x64xbf16>, vector<64x500xbf16>, vector<2x500xf32> -> vector<2x500xf32>
    %83 = arith.addf %78, %82 : vector<2x500xf32>
    %84 = vector.extract_strided_slice %42 {offsets = [16, 0], sizes = [2, 64], strides = [1, 1]} : vector<32x64xbf16> to vector<2x64xbf16>
    %c8 = arith.constant 8 : index
    %c0_47 = arith.constant 0 : index
    %c0_48 = arith.constant 0 : index
    %85 = vector.load %arg12[%c8, %c0_47, %c0_48] : memref<16x64x500xbf16, #tpu.memory_space<vmem>>, vector<1x64x500xbf16>
    %86 = vector.shape_cast %85 : vector<1x64x500xbf16> to vector<64x500xbf16>
    %cst_49 = arith.constant dense<0.000000e+00> : vector<2x500xf32>
    %87 = tpu.matmul %84, %86, %cst_49 {dimension_numbers = #tpu.dot_dimension_numbers<[1], [0], [0], [1], [0, 0, 1, 1], [], []>} : vector<2x64xbf16>, vector<64x500xbf16>, vector<2x500xf32> -> vector<2x500xf32>
    %88 = arith.addf %83, %87 : vector<2x500xf32>
    %89 = vector.extract_strided_slice %42 {offsets = [18, 0], sizes = [2, 64], strides = [1, 1]} : vector<32x64xbf16> to vector<2x64xbf16>
    %c9 = arith.constant 9 : index
    %c0_50 = arith.constant 0 : index
    %c0_51 = arith.constant 0 : index
    %90 = vector.load %arg12[%c9, %c0_50, %c0_51] : memref<16x64x500xbf16, #tpu.memory_space<vmem>>, vector<1x64x500xbf16>
    %91 = vector.shape_cast %90 : vector<1x64x500xbf16> to vector<64x500xbf16>
    %cst_52 = arith.constant dense<0.000000e+00> : vector<2x500xf32>
    %92 = tpu.matmul %89, %91, %cst_52 {dimension_numbers = #tpu.dot_dimension_numbers<[1], [0], [0], [1], [0, 0, 1, 1], [], []>} : vector<2x64xbf16>, vector<64x500xbf16>, vector<2x500xf32> -> vector<2x500xf32>
    %93 = arith.addf %88, %92 : vector<2x500xf32>
    %94 = vector.extract_strided_slice %42 {offsets = [20, 0], sizes = [2, 64], strides = [1, 1]} : vector<32x64xbf16> to vector<2x64xbf16>
    %c10 = arith.constant 10 : index
    %c0_53 = arith.constant 0 : index
    %c0_54 = arith.constant 0 : index
    %95 = vector.load %arg12[%c10, %c0_53, %c0_54] : memref<16x64x500xbf16, #tpu.memory_space<vmem>>, vector<1x64x500xbf16>
    %96 = vector.shape_cast %95 : vector<1x64x500xbf16> to vector<64x500xbf16>
    %cst_55 = arith.constant dense<0.000000e+00> : vector<2x500xf32>
    %97 = tpu.matmul %94, %96, %cst_55 {dimension_numbers = #tpu.dot_dimension_numbers<[1], [0], [0], [1], [0, 0, 1, 1], [], []>} : vector<2x64xbf16>, vector<64x500xbf16>, vector<2x500xf32> -> vector<2x500xf32>
    %98 = arith.addf %93, %97 : vector<2x500xf32>
    %99 = vector.extract_strided_slice %42 {offsets = [22, 0], sizes = [2, 64], strides = [1, 1]} : vector<32x64xbf16> to vector<2x64xbf16>
    %c11 = arith.constant 11 : index
    %c0_56 = arith.constant 0 : index
    %c0_57 = arith.constant 0 : index
    %100 = vector.load %arg12[%c11, %c0_56, %c0_57] : memref<16x64x500xbf16, #tpu.memory_space<vmem>>, vector<1x64x500xbf16>
    %101 = vector.shape_cast %100 : vector<1x64x500xbf16> to vector<64x500xbf16>
    %cst_58 = arith.constant dense<0.000000e+00> : vector<2x500xf32>
    %102 = tpu.matmul %99, %101, %cst_58 {dimension_numbers = #tpu.dot_dimension_numbers<[1], [0], [0], [1], [0, 0, 1, 1], [], []>} : vector<2x64xbf16>, vector<64x500xbf16>, vector<2x500xf32> -> vector<2x500xf32>
    %103 = arith.addf %98, %102 : vector<2x500xf32>
    %104 = vector.extract_strided_slice %42 {offsets = [24, 0], sizes = [2, 64], strides = [1, 1]} : vector<32x64xbf16> to vector<2x64xbf16>
    %c12 = arith.constant 12 : index
    %c0_59 = arith.constant 0 : index
    %c0_60 = arith.constant 0 : index
    %105 = vector.load %arg12[%c12, %c0_59, %c0_60] : memref<16x64x500xbf16, #tpu.memory_space<vmem>>, vector<1x64x500xbf16>
    %106 = vector.shape_cast %105 : vector<1x64x500xbf16> to vector<64x500xbf16>
    %cst_61 = arith.constant dense<0.000000e+00> : vector<2x500xf32>
    %107 = tpu.matmul %104, %106, %cst_61 {dimension_numbers = #tpu.dot_dimension_numbers<[1], [0], [0], [1], [0, 0, 1, 1], [], []>} : vector<2x64xbf16>, vector<64x500xbf16>, vector<2x500xf32> -> vector<2x500xf32>
    %108 = arith.addf %103, %107 : vector<2x500xf32>
    %109 = vector.extract_strided_slice %42 {offsets = [26, 0], sizes = [2, 64], strides = [1, 1]} : vector<32x64xbf16> to vector<2x64xbf16>
    %c13 = arith.constant 13 : index
    %c0_62 = arith.constant 0 : index
    %c0_63 = arith.constant 0 : index
    %110 = vector.load %arg12[%c13, %c0_62, %c0_63] : memref<16x64x500xbf16, #tpu.memory_space<vmem>>, vector<1x64x500xbf16>
    %111 = vector.shape_cast %110 : vector<1x64x500xbf16> to vector<64x500xbf16>
    %cst_64 = arith.constant dense<0.000000e+00> : vector<2x500xf32>
    %112 = tpu.matmul %109, %111, %cst_64 {dimension_numbers = #tpu.dot_dimension_numbers<[1], [0], [0], [1], [0, 0, 1, 1], [], []>} : vector<2x64xbf16>, vector<64x500xbf16>, vector<2x500xf32> -> vector<2x500xf32>
    %113 = arith.addf %108, %112 : vector<2x500xf32>
    %114 = vector.extract_strided_slice %42 {offsets = [28, 0], sizes = [2, 64], strides = [1, 1]} : vector<32x64xbf16> to vector<2x64xbf16>
    %c14 = arith.constant 14 : index
    %c0_65 = arith.constant 0 : index
    %c0_66 = arith.constant 0 : index
    %115 = vector.load %arg12[%c14, %c0_65, %c0_66] : memref<16x64x500xbf16, #tpu.memory_space<vmem>>, vector<1x64x500xbf16>
    %116 = vector.shape_cast %115 : vector<1x64x500xbf16> to vector<64x500xbf16>
    %cst_67 = arith.constant dense<0.000000e+00> : vector<2x500xf32>
    %117 = tpu.matmul %114, %116, %cst_67 {dimension_numbers = #tpu.dot_dimension_numbers<[1], [0], [0], [1], [0, 0, 1, 1], [], []>} : vector<2x64xbf16>, vector<64x500xbf16>, vector<2x500xf32> -> vector<2x500xf32>
    %118 = arith.addf %113, %117 : vector<2x500xf32>
    %119 = vector.extract_strided_slice %42 {offsets = [30, 0], sizes = [2, 64], strides = [1, 1]} : vector<32x64xbf16> to vector<2x64xbf16>
    %c15 = arith.constant 15 : index
    %c0_68 = arith.constant 0 : index
    %c0_69 = arith.constant 0 : index
    %120 = vector.load %arg12[%c15, %c0_68, %c0_69] : memref<16x64x500xbf16, #tpu.memory_space<vmem>>, vector<1x64x500xbf16>
    %121 = vector.shape_cast %120 : vector<1x64x500xbf16> to vector<64x500xbf16>
    %cst_70 = arith.constant dense<0.000000e+00> : vector<2x500xf32>
    %122 = tpu.matmul %119, %121, %cst_70 {dimension_numbers = #tpu.dot_dimension_numbers<[1], [0], [0], [1], [0, 0, 1, 1], [], []>} : vector<2x64xbf16>, vector<64x500xbf16>, vector<2x500xf32> -> vector<2x500xf32>
    %123 = arith.addf %118, %122 : vector<2x500xf32>
    %c0_71 = arith.constant 0 : index
    %c0_72 = arith.constant 0 : index
    %124 = vector.load %arg7[%c0_71, %c0_72] : memref<1x500xf32, #tpu.memory_space<vmem>>, vector<1x500xf32>
    %125 = vector.broadcast %124 : vector<1x500xf32> to vector<2x500xf32>
    %126 = arith.addf %123, %125 : vector<2x500xf32>
    %cst_73 = arith.constant 0.000000e+00 : f32
    %127 = vector.broadcast %cst_73 : f32 to vector<2x500xf32>
    %128 = arith.maximumf %126, %127 : vector<2x500xf32>
    %129 = arith.truncf %128 : vector<2x500xf32> to vector<2x500xbf16>
    %c0_74 = arith.constant 0 : index
    %c0_75 = arith.constant 0 : index
    %130 = vector.load %arg8[%c0_74, %c0_75] : memref<500x10xbf16, #tpu.memory_space<vmem>>, vector<500x10xbf16>
    %cst_76 = arith.constant dense<0.000000e+00> : vector<2x10xf32>
    %131 = tpu.matmul %129, %130, %cst_76 {dimension_numbers = #tpu.dot_dimension_numbers<[1], [0], [0], [1], [0, 0, 1, 1], [], []>} : vector<2x500xbf16>, vector<500x10xbf16>, vector<2x10xf32> -> vector<2x10xf32>
    %c0_77 = arith.constant 0 : index
    %c0_78 = arith.constant 0 : index
    %132 = vector.load %arg9[%c0_77, %c0_78] : memref<1x10xf32, #tpu.memory_space<vmem>>, vector<1x10xf32>
    %133 = vector.broadcast %132 : vector<1x10xf32> to vector<2x10xf32>
    %134 = arith.addf %131, %133 : vector<2x10xf32>
    %cst_79 = arith.constant dense<0xFF800000> : vector<2xf32>
    %135 = vector.multi_reduction <maximumf>, %134, %cst_79 [1] : vector<2x10xf32> to vector<2xf32>
    %136 = vector.shape_cast %135 : vector<2xf32> to vector<2x1xf32>
    %137 = vector.broadcast %136 : vector<2x1xf32> to vector<2x10xf32>
    %138 = arith.subf %134, %137 : vector<2x10xf32>
    %139 = math.exp %138 : vector<2x10xf32>
    %cst_80 = arith.constant dense<0.000000e+00> : vector<2xf32>
    %140 = vector.multi_reduction <add>, %139, %cst_80 [1] : vector<2x10xf32> to vector<2xf32>
    %141 = vector.shape_cast %140 : vector<2xf32> to vector<2x1xf32>
    %142 = math.log %141 : vector<2x1xf32>
    %143 = vector.broadcast %142 : vector<2x1xf32> to vector<2x10xf32>
    %144 = arith.subf %138, %143 : vector<2x10xf32>
    %c0_81 = arith.constant 0 : index
    %c0_82 = arith.constant 0 : index
    %145 = vector.load %arg11[%c0_81, %c0_82] : memref<2x10xf32, #tpu.memory_space<vmem>>, vector<2x10xf32>
    tpu.vector_store %arg11[%c0_81, %c0_82], %144 {strides = array<i32>} : memref<2x10xf32, #tpu.memory_space<vmem>>, vector<2x10xf32>,
    return
  }
}

</mosaic_0001>

<bundles_post_ra>
// kernel: mock_model_forward.1
= control target key start
LH: loop header
LB: loop body
LE: loop exit
PB: predicated region body
PF: predicated region fallthrough
CT: control target
= control target key end

     0   :  { %v4695_v2 = vmov 0   ;;  %s5228_s0 = inlined_call_operand.vmem [shape: f32[32,1], index: 0, kind: input, shape index: {}]   ;;  %s5229_s1 = inlined_call_operand.vmem [shape: f32[1,20], index: 1, kind: input, shape index: {}]   ;;  %s5230_s2 = inlined_call_operand.vmem [shape: f32[1,20], index: 2, kind: input, shape index: {}]   ;;  %s5231_s3 = inlined_call_operand.vmem [shape: f32[1,20], index: 3, kind: input, shape index: {}]   ;;  %s5232_s4 = inlined_call_operand.vmem [shape: f32[1,20], index: 4, kind: input, shape index: {}]   ;;  %s5233_s5 = inlined_call_operand.vmem [shape: f32[20,64], index: 5, kind: input, shape index: {}]   ;;  %s5234_s6 = inlined_call_operand.vmem [shape: f32[1,64], index: 6, kind: input, shape index: {}]   ;;  %s5235_s7 = inlined_call_operand.vmem [shape: f32[1,500], index: 7, kind: input, shape index: {}]   ;;  %s5236_s8 = inlined_call_operand.vmem [shape: bf16[500,10], index: 8, kind: input, shape index: {}]   ;;  %s5237_s9 = inlined_call_operand.vmem [shape: f32[1,10], index: 9, kind: input, shape index: {}]   ;;  %s5238_s10 = inlined_call_operand.hbm [shape: bf16[16,64,500], index: 10, kind: input, shape index: {}]   ;;  %s5239_s11 = inlined_call_operand.hbm [shape: f32[2,10], index: 11, kind: output, shape index: {}]  }
   0x1   :  { %v53_v0 = vld [vmem:[%s5228_s0 + $0x10] sm:$0xff]  ;;  %v51_v1 = vld [vmem:[%s5228_s0] sm:$0xff]  ;;  %4630 = vset.pattern.permute.xlu1 %v4695_v2  ;;  %4629 = vset.pattern.permute.xlu0 %v4695_v2 }
   0x2   :  { %68 = vperm.xlu1 %4630, %v53_v0   ;;  %58 = vperm.xlu0 %4629, %v51_v1  }
   0x3   :  { %16 = vsyncpa [#allocation5], 0  ;;  %v54_v3 = vld [vmem:[%s5228_s0 + $0x18] sm:$0xff]  ;;  %v52_v4 = vld [vmem:[%s5228_s0 + $0x8] sm:$0xff]  ;;  %vm187_vm0 = vcmask 1043456   ;;  %v4696_v13 = vmov 32.0  }
   0x4   :  { %v4631_v5 = vld [vmem:[%s5229_s1] ss:$0 sm:$0xff]  ;;  %v170_v8 = vld [vmem:[%s5233_s5 + $0x10] sm:$0xf]  ;;  %v169_v9 = vld [vmem:[%s5233_s5 + $0x8] sm:$0xff]  ;;  %4634 = vrcp.f32 %v4696_v13  ;;  %vm91_vm1 = vcmask 162816  }
   0x5   :  { %3119 = vmatpush.msk.msra.mxu0 %vm187_vm0, %v170_v8  ;;  %v168_v10 = vld [vmem:[%s5233_s5] sm:$0xff]  ;;  %s45_s16 = sshll.u32 %s5238_s10, 4  ;;  %s4697_s17 = smov [#allocation2]   ;;  %s46_s16 = int_to_ptr.hbm [resolvable:$true] %s45_s16 }
   0x6   :  { %v4632_v11 = vld [vmem:[%s5230_s2] ss:$0 sm:$0xff]  ;;  %s47_s18 = sshll.u32 %s4697_s17, 4  ;;  %s48_s18 = int_to_ptr.vmem [resolvable:$true] %s47_s18 }
   0x7   :  { %205 = vmatpush.msra.mxu0 %v169_v9  ;;  %50 = dma.hbm_to_vmem [thread:$0]  %s46_s16, 32768, %s48_s18, [#allocation3] }
   0x9   :  { %206 = vmatpush.msra.mxu0 %v168_v10  ;;  %v147_v10 = vld [vmem:[%s5232_s4] sm:$0x1] }
   0xa   :  { %73 = vperm.xlu1 %4630, %v54_v3   ;;  %63 = vperm.xlu0 %4629, %v52_v4   ;;  %v4635_v18 = vpop.eup %4634 }
   0xb   :  { %v106_v25 = vmul.f32 32.0, %v4635_v18  ;;  %vm110_vm2 = vweird.f32 %v4635_v18 }
   0xd   :  { %v107_v39 = vsub.f32 1.0, %v106_v25 }
   0xf   :  { %v108_v45 = vmul.f32 %v4635_v18, %v107_v39 }
  0x11   :  { %v109_v50 = vadd.f32 %v4635_v18, %v108_v45 }
  0x13   :  { %v111_v55 = vsel %vm110_vm2, %v4635_v18, %v109_v50 }
  0x74   :  { %v69_v6 = vpop.permute.xlu1 %68  ;;  %v59_v7 = vpop.permute.xlu0 %58 }
  0x75   :  { %v79_v12 = vmul.f32 %v4631_v5, %v59_v7  ;;  %v81_v14 = vmul.f32 %v4631_v5, %v69_v6  ;;  %v134_v6 = vld [vmem:[%s5231_s3] sm:$0x1] }
  0x77   :  { %v4786_v15 = vadd.f32 %v4632_v11, %v79_v12  ;;  %v4788_v19 = vadd.f32 %v4632_v11, %v81_v14 }
  0x79   :  { %v113_v22 = vmul.f32 %v4786_v15, %v4786_v15  ;;  %v115_v26 = vmul.f32 %v4788_v19, %v4788_v19  ;;  %v92_v27 = vsel %vm91_vm1, %v4786_v15, 0.0  ;;  %v95_v31 = vsel %vm91_vm1, %v4788_v19, 0.0 }
  0x7b   :  { %v117_v32 = vsel %vm91_vm1, %v113_v22, 0.0  ;;  %v120_v37 = vsel %vm91_vm1, %v115_v26, 0.0 }
  0x7c   :  { %v74_v16 = vpop.permute.xlu1 %73  ;;  %v64_v17 = vpop.permute.xlu0 %63 }
  0x7d   :  { %v82_v20 = vmul.f32 %v4631_v5, %v74_v16  ;;  %v80_v21 = vmul.f32 %v4631_v5, %v64_v17 }
  0x7f   :  { %v4792_v23 = vadd.f32 %v4632_v11, %v82_v20  ;;  %v4794_v24 = vadd.f32 %v4632_v11, %v80_v21 }
  0x81   :  { %v93_v28 = vsel %vm91_vm1, %v4794_v24, 0.0  ;;  %v114_v29 = vmul.f32 %v4794_v24, %v4794_v24  ;;  %v116_v33 = vmul.f32 %v4792_v23, %v4792_v23  ;;  %v97_v38 = vsel %vm91_vm1, %v4792_v23, 0.0 }
  0x82   :  { %v94_v30 = vadd.f32 %v93_v28, %v92_v27 }
  0x83   :  { %v118_v34 = vsel %vm91_vm1, %v114_v29, 0.0  ;;  %v122_v42 = vsel %vm91_vm1, %v116_v33, 0.0 }
  0x84   :  { %v96_v35 = vadd.f32 %v95_v31, %v94_v30  ;;  %v119_v36 = vadd.f32 %v118_v34, %v117_v32 }
  0x86   :  { %v98_v40 = vadd.f32 %v97_v38, %v96_v35  ;;  %v121_v41 = vadd.f32 %v120_v37, %v119_v36 }
  0x88   :  { %v99_v43 = vrot.slane %v98_v40, 4  ;;  %v123_v44 = vadd.f32 %v122_v42, %v121_v41 }
  0x8a   :  { %v100_v46 = vadd.f32 %v99_v43, %v98_v40  ;;  %v124_v47 = vrot.slane %v123_v44, 4 }
  0x8c   :  { %v101_v48 = vrot.slane %v100_v46, 2  ;;  %v125_v49 = vadd.f32 %v124_v47, %v123_v44 }
  0x8e   :  { %v102_v51 = vadd.f32 %v101_v48, %v100_v46  ;;  %v126_v52 = vrot.slane %v125_v49, 2 }
  0x90   :  { %v103_v53 = vrot.slane %v102_v51, 1  ;;  %v127_v54 = vadd.f32 %v126_v52, %v125_v49 }
  0x92   :  { %v104_v56 = vadd.f32 %v103_v53, %v102_v51  ;;  %v128_v57 = vrot.slane %v127_v54, 1 }
  0x94   :  { %v129_v58 = vadd.f32 %v128_v57, %v127_v54  ;;  %v112_v59 = vmul.f32 %v111_v55, %v104_v56 }
  0x96   :  { %v130_v60 = vmul.f32 %v129_v58, %v111_v55  ;;  %v131_v61 = vmul.f32 %v112_v59, %v112_v59 }
  0x98   :  { %v132_v62 = vsub.f32 %v130_v60, %v131_v61 }
  0x9a   :  { %v133_v63 = vmax.f32 %v132_v62, 0.0 }
  0x9c   :  { %v135_v0 = vadd.f32 1e-05, %v133_v63 }
  0x9e   :  { %4636 = vrsqrt.f32 %v135_v0  ;;  %vm142_vm4 = vweird.f32 %v135_v0 }
  0xa4   :  { %v4637_v1 = vpop.eup %4636 }
  0xa5   :  { %v137_v2 = vmul.f32 %v4637_v1, %v135_v0  ;;  %vm143_vm3 = vweird.f32 %v4637_v1 }
  0xa6   :  { %vm144_vm5 = vmor %vm142_vm4, %vm143_vm3 }
  0xa7   :  { %v138_v3 = vmul.f32 %v4637_v1, %v137_v2 }
  0xa9   :  { %v139_v4 = vmul.f32 0.5, %v138_v3 }
  0xab   :  { %v140_v5 = vsub.f32 1.5, %v139_v4 }
  0xad   :  { %v141_v7 = vmul.f32 %v4637_v1, %v140_v5 }
  0xaf   :  { %v145_v8 = vsel %vm144_vm5, %v4637_v1, %v141_v7 }
  0xb0   :  { %v146_v9 = vmul.f32 %v145_v8, %v134_v6 }
  0xb2   :  { %v148_v11 = vmul.f32 %v146_v9, %v112_v59  ;;  %v151_v12 = vperm.slane %v146_v9, 0 }
  0xb4   :  { %v149_v13 = vsub.f32 %v147_v10, %v148_v11  ;;  %v153_v14 = vmul.f32 %v151_v12, %v4786_v15  ;;  %v154_v20 = vmul.f32 %v151_v12, %v4794_v24  ;;  %v155_v25 = vmul.f32 %v151_v12, %v4788_v19  ;;  %v4633_v19 = vld [vmem:[%s5234_s6] ss:$0 sm:$0xff] }
  0xb5   :  { %v156_v28 = vmul.f32 %v151_v12, %v4792_v23 }
  0xb6   :  { %v158_v16 = vperm.slane %v149_v13, 0 }
  0xb8   :  { %v160_v17 = vadd.f32 %v158_v16, %v153_v14  ;;  %v161_v21 = vadd.f32 %v158_v16, %v154_v20  ;;  %v162_v26 = vadd.f32 %v158_v16, %v155_v25  ;;  %v163_v15 = vadd.f32 %v158_v16, %v156_v28 }
  0xba   :  { %v164_v18 = vmax.f32 %v160_v17, 0.0  ;;  %v165_v22 = vmax.f32 %v161_v21, 0.0  ;;  %v166_v27 = vmax.f32 %v162_v26, 0.0  ;;  %v167_v29 = vmax.f32 %v163_v15, 0.0 }
  0xbc   :  { %3120 = vmatmul.msk.f32.vlgmr.msra.gmra.mxu0 %vm91_vm1, %v164_v18 }
  0xc4   :  { %3121 = vmatmul.msk.f32.gmra.mxu0 %vm91_vm1, %v165_v22 }
  0xcc   :  { %3122 = vmatmul.msk.f32.gmra.mxu0 %vm91_vm1, %v166_v27 }
  0xd4   :  { %3123 = vmatmul.msk.f32.gmra.mxu0 %vm91_vm1, %v167_v29 }
 0x139   :  { %v208_v24 = vpop.f32.mrf.mxu0 }
 0x13a   :  { %v209_v30 = vadd.f32 %v4633_v19, %v208_v24 }
 0x13c   :  { %v220_v23 = vmax.f32 %v209_v30, 0.0 }
 0x13e   :  { %v4834_v31 = vpack.c.bf16 %v220_v23, %v220_v23 }
 0x141   :  { %v211_v32 = vpop.f32.mrf.mxu0 }
 0x142   :  { %v212_v33 = vadd.f32 %v4633_v19, %v211_v32 }
 0x144   :  { %v221_v34 = vmax.f32 %v212_v33, 0.0 }
 0x146   :  { %v4836_v35 = vpack.c.bf16 %v221_v34, %v221_v34 }
 0x149   :  { %v214_v36 = vpop.f32.mrf.mxu0 }
 0x14a   :  { %v215_v37 = vadd.f32 %v4633_v19, %v214_v36 }
 0x14c   :  { %v222_v38 = vmax.f32 %v215_v37, 0.0 }
 0x14e   :  { %v4838_v39 = vpack.c.bf16 %v222_v38, %v222_v38 }
 0x151   :  { %v217_v40 = vpop.f32.mrf.mxu0 }
 0x152   :  { %v218_v41 = vadd.f32 %v4633_v19, %v217_v40 }
 0x154   :  { %v223_v42 = vmax.f32 %v218_v41, 0.0 }
 0x156   :  { %v4840_v43 = vpack.c.bf16 %v223_v42, %v223_v42 }
 0x157   :  { %4691 = dma.done.wait [#allocation3], 32768 }
 0x158   :  { %4692 = vsyncadd [#allocation3], 4294934528  ;;  %v3174_v44 = vld [vmem:[#allocation2 + $0xe0] sm:$0xf]  ;;  %v4368_v45 = vld [vmem:[#allocation2 + $0xec] sm:$0xf0]  ;;  %v267_v1 = vunpack.c.l.b16 %v4834_v31 }
 0x159   :  { %v4366_v46 = vld [vmem:[#allocation2 + $0xe4] sm:$0xf]  ;;  %v3175_v47 = vor.u32 %v4368_v45, %v3174_v44  ;;  %v3176_v48 = vld [vmem:[#allocation2 + $0xf0] sm:$0xf0]  ;;  %v3182_v49 = vld [vmem:[#allocation2 + $0xe8] sm:$0xf] }
 0x15a   :  { %v4369_v50 = vld [vmem:[#allocation2 + $0xf4] sm:$0xf0]  ;;  %v3179_v51 = vor.u32 %v4366_v46, %v3176_v48  ;;  %v3250_v53 = vld [vmem:[#allocation2 + $0x68] sm:$0xf]  ;;  %v3158_v55 = vld [vmem:[#allocation2 + $0xc0] sm:$0xf]  ;;  %v4843_v21 = vpack.c.b16 %v267_v1, %v267_v1 }
 0x15b   :  { %v3183_v52 = vor.u32 %v4369_v50, %v3182_v49  ;;  %v4353_v54 = vld [vmem:[#allocation2 + $0x74] sm:$0xf0]  ;;  %358 = vmatpush.bf16.msra.mxu1 %v3175_v47  ;;  %v4364_v57 = vld [vmem:[#allocation2 + $0xcc] sm:$0xf0]  ;;  %v4362_v58 = vld [vmem:[#allocation2 + $0xc4] sm:$0xf] }
 0x15c   :  { %v3251_v56 = vor.u32 %v4353_v54, %v3250_v53  ;;  %v3160_v59 = vld [vmem:[#allocation2 + $0xd0] sm:$0xf0]  ;;  %371 = vmatpush.bf16.msra.mxu2 %v3179_v51  ;;  %v3159_v60 = vor.u32 %v4364_v57, %v3158_v55  ;;  %v3166_v62 = vld [vmem:[#allocation2 + $0xc8] sm:$0xf]  ;;  %v4365_v63 = vld [vmem:[#allocation2 + $0xd4] sm:$0xf0] }
 0x15d   :  { %384 = vmatpush.bf16.msra.mxu3 %v3183_v52  ;;  %v3163_v61 = vor.u32 %v4362_v58, %v3160_v59  ;;  %v3234_v0 = vld [vmem:[#allocation2 + $0x48] sm:$0xf]  ;;  %v3167_v2 = vor.u32 %v4365_v63, %v3166_v62  ;;  %v4349_v3 = vld [vmem:[#allocation2 + $0x54] sm:$0xf0]  ;;  %v3142_v4 = vld [vmem:[#allocation2 + $0xa0] sm:$0xf] }
 0x15e   :  { %519 = vmatpush.bf16.msrb.mxu0 %v3251_v56  ;;  %v4360_v5 = vld [vmem:[#allocation2 + $0xac] sm:$0xf0]  ;;  %v3235_v6 = vor.u32 %v4349_v3, %v3234_v0  ;;  %v4358_v7 = vld [vmem:[#allocation2 + $0xa4] sm:$0xf]  ;;  %v3144_v8 = vld [vmem:[#allocation2 + $0xb0] sm:$0xf0] }
 0x15f   :  { %v3150_v9 = vld [vmem:[#allocation2 + $0xa8] sm:$0xf]  ;;  %359 = vmatpush.bf16.msra.mxu1 %v3159_v60  ;;  %v3143_v10 = vor.u32 %v4360_v5, %v3142_v4  ;;  %v4361_v11 = vld [vmem:[#allocation2 + $0xb4] sm:$0xf0]  ;;  %v3147_v14 = vor.u32 %v4358_v7, %v3144_v8  ;;  %v3126_v17 = vld [vmem:[#allocation2 + $0x80] sm:$0xf] }
 0x160   :  { %v3218_v12 = vld [vmem:[#allocation2 + $0x28] sm:$0xf]  ;;  %v4345_v13 = vld [vmem:[#allocation2 + $0x34] sm:$0xf0]  ;;  %372 = vmatpush.bf16.msra.mxu2 %v3163_v61  ;;  %v3151_v16 = vor.u32 %v4361_v11, %v3150_v9  ;;  %v4356_v18 = vld [vmem:[#allocation2 + $0x8c] sm:$0xf0] }
 0x161   :  { %385 = vmatpush.bf16.msra.mxu3 %v3167_v2  ;;  %v4354_v20 = vld [vmem:[#allocation2 + $0x84] sm:$0xf]  ;;  %v3219_v22 = vor.u32 %v4345_v13, %v3218_v12  ;;  %v3128_v25 = vld [vmem:[#allocation2 + $0x90] sm:$0xf0]  ;;  %v3134_v26 = vld [vmem:[#allocation2 + $0x88] sm:$0xf]  ;;  %v3127_v19 = vor.u32 %v4356_v18, %v3126_v17 }
 0x162   :  { %520 = vmatpush.bf16.msrb.mxu0 %v3235_v6  ;;  %v4357_v27 = vld [vmem:[#allocation2 + $0x94] sm:$0xf0]  ;;  %v3202_v28 = vld [vmem:[#allocation2 + $0x8] sm:$0xf]  ;;  %v3242_v29 = vld [vmem:[#allocation2 + $0x60] sm:$0xf]  ;;  %v3131_v30 = vor.u32 %v4354_v20, %v3128_v25 }
 0x163   :  { %v4341_v15 = vld [vmem:[#allocation2 + $0x14] sm:$0xf0]  ;;  %360 = vmatpush.bf16.msra.mxu1 %v3143_v10  ;;  %v4352_v24 = vld [vmem:[#allocation2 + $0x6c] sm:$0xf0]  ;;  %v3135_v23 = vor.u32 %v4357_v27, %v3134_v26  ;;  %v4846_v32 = vrot.slane %v4843_v21, 1  ;;  %vm350_vm6 = vcmask 523264  }
 0x164   :  { %373 = vmatpush.bf16.msra.mxu2 %v3147_v14  ;;  %v4350_v33 = vld [vmem:[#allocation2 + $0x64] sm:$0xf]  ;;  %v3244_v34 = vld [vmem:[#allocation2 + $0x70] sm:$0xf0]  ;;  %v3203_v36 = vor.u32 %v4341_v15, %v3202_v28  ;;  %v3243_v37 = vor.u32 %v4352_v24, %v3242_v29  ;;  %v4367_v38 = vld [vmem:[#allocation2 + $0xec] sm:$0xf] }
 0x165   :  { %386 = vmatpush.bf16.msra.mxu3 %v3151_v16  ;;  %v3184_v40 = vld [vmem:[#allocation2 + $0xf8] sm:$0xf0]  ;;  %v3318_v41 = vld [vmem:[#allocation2 + $0x168] sm:$0xf]  ;;  %v3247_v42 = vor.u32 %v4350_v33, %v3244_v34  ;;  %v4385_v44 = vld [vmem:[#allocation2 + $0x174] sm:$0xf0] }
 0x166   :  { %521 = vmatpush.bf16.msrb.mxu0 %v3219_v22  ;;  %v3226_v45 = vld [vmem:[#allocation2 + $0x40] sm:$0xf]  ;;  %v4348_v46 = vld [vmem:[#allocation2 + $0x4c] sm:$0xf0]  ;;  %v4346_v47 = vld [vmem:[#allocation2 + $0x44] sm:$0xf]  ;;  %v3187_v49 = vor.u32 %v4367_v38, %v3184_v40  ;;  %v3319_v50 = vor.u32 %v4385_v44, %v3318_v41 }
 0x167   :  { %361 = vmatpush.bf16.msra.mxu1 %v3127_v19  ;;  %v3228_v48 = vld [vmem:[#allocation2 + $0x50] sm:$0xf0]  ;;  %v3227_v51 = vor.u32 %v4348_v46, %v3226_v45  ;;  %v4363_v52 = vld [vmem:[#allocation2 + $0xcc] sm:$0xf]  ;;  %v3168_v53 = vld [vmem:[#allocation2 + $0xd8] sm:$0xf0] }
 0x168   :  { %374 = vmatpush.bf16.msra.mxu2 %v3131_v30  ;;  %v3302_v54 = vld [vmem:[#allocation2 + $0x148] sm:$0xf]  ;;  %v3231_v55 = vor.u32 %v4346_v47, %v3228_v48  ;;  %v4381_v56 = vld [vmem:[#allocation2 + $0x154] sm:$0xf0]  ;;  %v3210_v57 = vld [vmem:[#allocation2 + $0x20] sm:$0xf]  ;;  %v3171_v61 = vor.u32 %v4363_v52, %v3168_v53 }
 0x169   :  { %387 = vmatpush.bf16.msra.mxu3 %v3135_v23  ;;  %v4344_v58 = vld [vmem:[#allocation2 + $0x2c] sm:$0xf0]  ;;  %v4342_v59 = vld [vmem:[#allocation2 + $0x24] sm:$0xf]  ;;  %v3212_v60 = vld [vmem:[#allocation2 + $0x30] sm:$0xf0]  ;;  %v3303_v63 = vor.u32 %v4381_v56, %v3302_v54 }
 0x16a   :  { %522 = vmatpush.bf16.msrb.mxu0 %v3203_v36  ;;  %3188 = vmatmul.msk.bf16.vlgmr.msra.gmra.mxu1 %vm350_vm6, %v4846_v32  ;;  %v4359_v62 = vld [vmem:[#allocation2 + $0xac] sm:$0xf]  ;;  %v3211_v0 = vor.u32 %v4344_v58, %v3210_v57  ;;  %v3152_v1 = vld [vmem:[#allocation2 + $0xb8] sm:$0xf0]  ;;  %v3286_v2 = vld [vmem:[#allocation2 + $0x128] sm:$0xf]  ;;  %v3215_v4 = vor.u32 %v4342_v59, %v3212_v60 }
 0x16b   :  { %3189 = vmatmul.msk.bf16.vlgmr.msra.gmra.mxu2 %vm350_vm6, %v4846_v32  ;;  %397 = vmatpush.bf16.msrb.mxu1 %v3187_v49  ;;  %v4377_v3 = vld [vmem:[#allocation2 + $0x134] sm:$0xf0]  ;;  %v3194_v5 = vld [vmem:[#allocation2] sm:$0xf]  ;;  %v4340_v6 = vld [vmem:[#allocation2 + $0xc] sm:$0xf0]  ;;  %v3155_v11 = vor.u32 %v4359_v62, %v3152_v1 }
 0x16c   :  { %493 = vmatpush.bf16.msrb.mxu2 %v3243_v37  ;;  %3190 = vmatmul.msk.bf16.vlgmr.msra.gmra.mxu3 %vm350_vm6, %v4846_v32  ;;  %v4338_v7 = vld [vmem:[#allocation2 + $0x4] sm:$0xf]  ;;  %v3196_v8 = vld [vmem:[#allocation2 + $0x10] sm:$0xf0]  ;;  %v3310_v9 = vld [vmem:[#allocation2 + $0x160] sm:$0xf]  ;;  %v3287_v16 = vor.u32 %v4377_v3, %v3286_v2  ;;  %v3195_v17 = vor.u32 %v4340_v6, %v3194_v5 }
 0x16d   :  { %506 = vmatpush.bf16.msrb.mxu3 %v3247_v42  ;;  %3258 = vmatmul.msk.bf16.vlgmr.msrb.gmra.mxu0 %vm350_vm6, %v4834_v31  ;;  %v4384_v10 = vld [vmem:[#allocation2 + $0x16c] sm:$0xf0]  ;;  %v4355_v12 = vld [vmem:[#allocation2 + $0x8c] sm:$0xf]  ;;  %v4382_v13 = vld [vmem:[#allocation2 + $0x164] sm:$0xf]  ;;  %v3199_v25 = vor.u32 %v4338_v7, %v3196_v8 }
 0x16e   :  { %672 = vmatpush.bf16.msra.mxu0 %v3319_v50  ;;  %v3312_v14 = vld [vmem:[#allocation2 + $0x170] sm:$0xf0]  ;;  %v3136_v18 = vld [vmem:[#allocation2 + $0x98] sm:$0xf0]  ;;  %v3270_v20 = vld [vmem:[#allocation2 + $0x108] sm:$0xf]  ;;  %v3311_v26 = vor.u32 %v4384_v10, %v3310_v9 }
 0x16f   :  { %398 = vmatpush.bf16.msrb.mxu1 %v3171_v61  ;;  %v4373_v22 = vld [vmem:[#allocation2 + $0x114] sm:$0xf0]  ;;  %v4351_v27 = vld [vmem:[#allocation2 + $0x6c] sm:$0xf]  ;;  %v3252_v28 = vld [vmem:[#allocation2 + $0x78] sm:$0xf0]  ;;  %v3315_v29 = vor.u32 %v4382_v13, %v3312_v14  ;;  %v3139_v23 = vor.u32 %v4355_v12, %v3136_v18 }
 0x170   :  { %494 = vmatpush.bf16.msrb.mxu2 %v3227_v51  ;;  %v3386_v15 = vld [vmem:[#allocation2 + $0x1e8] sm:$0xf]  ;;  %v4401_v19 = vld [vmem:[#allocation2 + $0x1f4] sm:$0xf0]  ;;  %v3294_v24 = vld [vmem:[#allocation2 + $0x140] sm:$0xf]  ;;  %v3271_v33 = vor.u32 %v4373_v22, %v3270_v20  ;;  %v3255_v34 = vor.u32 %v4351_v27, %v3252_v28 }
 0x171   :  { %507 = vmatpush.bf16.msrb.mxu3 %v3231_v55  ;;  %v4380_v30 = vld [vmem:[#allocation2 + $0x14c] sm:$0xf0]  ;;  %v4347_v36 = vld [vmem:[#allocation2 + $0x4c] sm:$0xf]  ;;  %v3236_v37 = vld [vmem:[#allocation2 + $0x58] sm:$0xf0]  ;;  %v3387_v38 = vor.u32 %v4401_v19, %v3386_v15 }
 0x172   :  { %673 = vmatpush.bf16.msra.mxu0 %v3303_v63  ;;  %v3295_v40 = vor.u32 %v4380_v30, %v3294_v24  ;;  %v4378_v41 = vld [vmem:[#allocation2 + $0x144] sm:$0xf]  ;;  %v3296_v42 = vld [vmem:[#allocation2 + $0x150] sm:$0xf0]  ;;  %v3370_v44 = vld [vmem:[#allocation2 + $0x1c8] sm:$0xf]  ;;  %v3239_v49 = vor.u32 %v4347_v36, %v3236_v37 }
 0x173   :  { %399 = vmatpush.bf16.msrb.mxu1 %v3155_v11  ;;  %v4397_v45 = vld [vmem:[#allocation2 + $0x1d4] sm:$0xf0]  ;;  %v3278_v46 = vld [vmem:[#allocation2 + $0x120] sm:$0xf]  ;;  %v4376_v47 = vld [vmem:[#allocation2 + $0x12c] sm:$0xf0]  ;;  %v3299_v50 = vor.u32 %v4378_v41, %v3296_v42 }
 0x174   :  { %495 = vmatpush.bf16.msrb.mxu2 %v3211_v0  ;;  %v4857_v48 = vrot.slane %v4843_v21, 2  ;;  %v4343_v51 = vld [vmem:[#allocation2 + $0x2c] sm:$0xf]  ;;  %v3220_v52 = vld [vmem:[#allocation2 + $0x38] sm:$0xf0]  ;;  %v3371_v53 = vor.u32 %v4397_v45, %v3370_v44  ;;  %v3279_v54 = vor.u32 %v4376_v47, %v3278_v46  ;;  %vm3027_vm7 = vcmask 1041408  }
 0x175   :  { %508 = vmatpush.bf16.msrb.mxu3 %v3215_v4  ;;  %v4374_v55 = vld [vmem:[#allocation2 + $0x124] sm:$0xf]  ;;  %v3280_v56 = vld [vmem:[#allocation2 + $0x130] sm:$0xf0]  ;;  %v3354_v57 = vld [vmem:[#allocation2 + $0x1a8] sm:$0xf]  ;;  %v3223_v63 = vor.u32 %v4343_v51, %v3220_v52 }
 0x176   :  { %674 = vmatpush.bf16.msra.mxu0 %v3287_v16  ;;  %v4393_v58 = vld [vmem:[#allocation2 + $0x1b4] sm:$0xf0]  ;;  %v3262_v59 = vld [vmem:[#allocation2 + $0x100] sm:$0xf]  ;;  %v4372_v60 = vld [vmem:[#allocation2 + $0x10c] sm:$0xf0]  ;;  %v3283_v0 = vor.u32 %v4374_v55, %v3280_v56 }
 0x177   :  { %400 = vmatpush.bf16.msrb.mxu1 %v3139_v23  ;;  %v3378_v61 = vld [vmem:[#allocation2 + $0x1e0] sm:$0xf]  ;;  %v4400_v62 = vld [vmem:[#allocation2 + $0x1ec] sm:$0xf0]  ;;  %v4339_v1 = vld [vmem:[#allocation2 + $0xc] sm:$0xf]  ;;  %v3355_v3 = vor.u32 %v4393_v58, %v3354_v57  ;;  %v3263_v4 = vor.u32 %v4372_v60, %v3262_v59 }
 0x178   :  { %496 = vmatpush.bf16.msrb.mxu2 %v3195_v17  ;;  %v4370_v2 = vld [vmem:[#allocation2 + $0x104] sm:$0xf]  ;;  %v3264_v5 = vld [vmem:[#allocation2 + $0x110] sm:$0xf0]  ;;  %v3338_v6 = vld [vmem:[#allocation2 + $0x188] sm:$0xf]  ;;  %v3379_v8 = vor.u32 %v4400_v62, %v3378_v61 }
 0x179   :  { %509 = vmatpush.bf16.msrb.mxu3 %v3199_v25  ;;  %v4389_v7 = vld [vmem:[#allocation2 + $0x194] sm:$0xf0]  ;;  %v4383_v9 = vld [vmem:[#allocation2 + $0x16c] sm:$0xf]  ;;  %v3320_v10 = vld [vmem:[#allocation2 + $0x178] sm:$0xf0]  ;;  %v3267_v17 = vor.u32 %v4370_v2, %v3264_v5 }
 0x17a   :  { %675 = vmatpush.bf16.msra.mxu0 %v3271_v33  ;;  %3191 = vmatmul.msk.bf16.vlgmr.msrb.gmra.mxu1 %vm350_vm6, %v4846_v32  ;;  %v3204_v32 = vld [vmem:[#allocation2 + $0x18] sm:$0xf0]  ;;  %v4398_v11 = vld [vmem:[#allocation2 + $0x1e4] sm:$0xf]  ;;  %v3380_v12 = vld [vmem:[#allocation2 + $0x1f0] sm:$0xf0]  ;;  %v3339_v22 = vor.u32 %v4389_v7, %v3338_v6  ;;  %v3323_v25 = vor.u32 %v4383_v9, %v3320_v10 }
 0x17b   :  { %532 = vmatpush.bf16.msra.mxu1 %v3255_v34  ;;  %3256 = vmatmul.msk.bf16.vlgmr.msrb.gmra.mxu2 %vm350_vm6, %v4834_v31  ;;  %v3454_v13 = vld [vmem:[#allocation2 + $0x268] sm:$0xf]  ;;  %v4417_v14 = vld [vmem:[#allocation2 + $0x274] sm:$0xf0]  ;;  %v3207_v16 = vor.u32 %v4339_v1, %v3204_v32  ;;  %v3362_v18 = vld [vmem:[#allocation2 + $0x1c0] sm:$0xf] }
 0x17c   :  { %646 = vmatpush.bf16.msra.mxu2 %v3311_v26  ;;  %3257 = vmatmul.msk.bf16.vlgmr.msrb.gmra.mxu3 %vm350_vm6, %v4834_v31  ;;  %v4396_v20 = vld [vmem:[#allocation2 + $0x1cc] sm:$0xf0]  ;;  %v3383_v26 = vor.u32 %v4398_v11, %v3380_v12  ;;  %v3455_v27 = vor.u32 %v4417_v14, %v3454_v13  ;;  %v4379_v28 = vld [vmem:[#allocation2 + $0x14c] sm:$0xf]  ;;  %v3304_v15 = vld [vmem:[#allocation2 + $0x158] sm:$0xf0] }
 0x17d   :  { %659 = vmatpush.bf16.msra.mxu3 %v3315_v29  ;;  %3326 = vmatmul.msk.bf16.vlgmr.msra.gmra.mxu0 %vm350_vm6, %v4857_v48  ;;  %v3363_v29 = vor.u32 %v4396_v20, %v3362_v18  ;;  %v4394_v19 = vld [vmem:[#allocation2 + $0x1c4] sm:$0xf]  ;;  %v3364_v24 = vld [vmem:[#allocation2 + $0x1d0] sm:$0xf0]  ;;  %v3307_v30 = vor.u32 %v4379_v28, %v3304_v15  ;;  %v3438_v23 = vld [vmem:[#allocation2 + $0x248] sm:$0xf] }
 0x17e   :  { %829 = vmatpush.bf16.msrb.mxu0 %v3387_v38  ;;  %v4413_v33 = vld [vmem:[#allocation2 + $0x254] sm:$0xf0]  ;;  %v3346_v34 = vld [vmem:[#allocation2 + $0x1a0] sm:$0xf]  ;;  %v4392_v36 = vld [vmem:[#allocation2 + $0x1ac] sm:$0xf0]  ;;  %v3367_v41 = vor.u32 %v4394_v19, %v3364_v24 }
 0x17f   :  { %533 = vmatpush.bf16.msra.mxu1 %v3239_v49  ;;  %v4375_v37 = vld [vmem:[#allocation2 + $0x12c] sm:$0xf]  ;;  %v3288_v38 = vld [vmem:[#allocation2 + $0x138] sm:$0xf0]  ;;  %v3439_v42 = vor.u32 %v4413_v33, %v3438_v23  ;;  %v4390_v44 = vld [vmem:[#allocation2 + $0x1a4] sm:$0xf]  ;;  %v3347_v47 = vor.u32 %v4392_v36, %v3346_v34 }
 0x180   :  { %647 = vmatpush.bf16.msra.mxu2 %v3295_v40  ;;  %v4868_v40 = vrot.slane %v4843_v21, 3  ;;  %v3348_v45 = vld [vmem:[#allocation2 + $0x1b0] sm:$0xf0]  ;;  %v3422_v46 = vld [vmem:[#allocation2 + $0x228] sm:$0xf]  ;;  %v3291_v49 = vor.u32 %v4375_v37, %v3288_v38  ;;  %vm3023_vm8 = vcmask 949248  }
 0x181   :  { %660 = vmatpush.bf16.msra.mxu3 %v3299_v50  ;;  %v4409_v50 = vld [vmem:[#allocation2 + $0x234] sm:$0xf0]  ;;  %v3330_v51 = vld [vmem:[#allocation2 + $0x180] sm:$0xf]  ;;  %v4388_v52 = vld [vmem:[#allocation2 + $0x18c] sm:$0xf0]  ;;  %v3351_v58 = vor.u32 %v4390_v44, %v3348_v45 }
 0x182   :  { %830 = vmatpush.bf16.msrb.mxu0 %v3371_v53  ;;  %v4371_v21 = vld [vmem:[#allocation2 + $0x10c] sm:$0xf]  ;;  %v3272_v53 = vld [vmem:[#allocation2 + $0x118] sm:$0xf0]  ;;  %v4416_v55 = vld [vmem:[#allocation2 + $0x26c] sm:$0xf0]  ;;  %v3423_v59 = vor.u32 %v4409_v50, %v3422_v46  ;;  %v3331_v62 = vor.u32 %v4388_v52, %v3330_v51 }
 0x183   :  { %534 = vmatpush.bf16.msra.mxu1 %v3223_v63  ;;  %v4399_v56 = vld [vmem:[#allocation2 + $0x1ec] sm:$0xf]  ;;  %v3388_v57 = vld [vmem:[#allocation2 + $0x1f8] sm:$0xf0]  ;;  %v3332_v60 = vld [vmem:[#allocation2 + $0x190] sm:$0xf0]  ;;  %v3275_v63 = vor.u32 %v4371_v21, %v3272_v53 }
 0x184   :  { %648 = vmatpush.bf16.msra.mxu2 %v3279_v54  ;;  %v3446_v54 = vld [vmem:[#allocation2 + $0x260] sm:$0xf]  ;;  %v3406_v61 = vld [vmem:[#allocation2 + $0x208] sm:$0xf]  ;;  %v4414_v1 = vld [vmem:[#allocation2 + $0x264] sm:$0xf] }
 0x185   :  { %661 = vmatpush.bf16.msra.mxu3 %v3283_v0  ;;  %v4405_v0 = vld [vmem:[#allocation2 + $0x214] sm:$0xf0]  ;;  %v3448_v32 = vld [vmem:[#allocation2 + $0x270] sm:$0xf0]  ;;  %v3447_v2 = vor.u32 %v4416_v55, %v3446_v54  ;;  %v3430_v6 = vld [vmem:[#allocation2 + $0x240] sm:$0xf] }
 0x186   :  { %831 = vmatpush.bf16.msrb.mxu0 %v3355_v3  ;;  %v3391_v3 = vor.u32 %v4399_v56, %v3388_v57  ;;  %v4433_v5 = vld [vmem:[#allocation2 + $0x2f4] sm:$0xf0]  ;;  %v4412_v7 = vld [vmem:[#allocation2 + $0x24c] sm:$0xf0]  ;;  %v3372_v9 = vld [vmem:[#allocation2 + $0x1d8] sm:$0xf0]  ;;  %v3407_v11 = vor.u32 %v4405_v0, %v3406_v61  ;;  %v3451_v12 = vor.u32 %v4414_v1, %v3448_v32 }
 0x187   :  { %535 = vmatpush.bf16.msra.mxu1 %v3207_v16  ;;  %v4410_v14 = vld [vmem:[#allocation2 + $0x244] sm:$0xf]  ;;  %v3431_v16 = vor.u32 %v4412_v7, %v3430_v6  ;;  %v3432_v18 = vld [vmem:[#allocation2 + $0x250] sm:$0xf0]  ;;  %v3506_v20 = vld [vmem:[#allocation2 + $0x2c8] sm:$0xf] }
 0x188   :  { %649 = vmatpush.bf16.msra.mxu2 %v3263_v4  ;;  %v3522_v4 = vld [vmem:[#allocation2 + $0x2e8] sm:$0xf]  ;;  %v4391_v15 = vld [vmem:[#allocation2 + $0x1ac] sm:$0xf]  ;;  %v4406_v19 = vld [vmem:[#allocation2 + $0x224] sm:$0xf] }
 0x189   :  { %662 = vmatpush.bf16.msra.mxu3 %v3267_v17  ;;  %v3523_v13 = vor.u32 %v4433_v5, %v3522_v4  ;;  %v3416_v24 = vld [vmem:[#allocation2 + $0x230] sm:$0xf0]  ;;  %v4425_v23 = vld [vmem:[#allocation2 + $0x2b4] sm:$0xf0]  ;;  %v3398_v33 = vld [vmem:[#allocation2 + $0x200] sm:$0xf] }
 0x18a   :  { %832 = vmatpush.bf16.msrb.mxu0 %v3339_v22  ;;  %3259 = vmatmul.msk.bf16.vlgmr.msra.gmra.mxu1 %vm350_vm6, %v4834_v31  ;;  %v4386_v31 = vld [vmem:[#allocation2 + $0x184] sm:$0xf]  ;;  %v4429_v22 = vld [vmem:[#allocation2 + $0x2d4] sm:$0xf0]  ;;  %v4404_v37 = vld [vmem:[#allocation2 + $0x20c] sm:$0xf0] }
 0x18b   :  { %685 = vmatpush.bf16.msrb.mxu1 %v3323_v25  ;;  %3324 = vmatmul.msk.bf16.vlgmr.msra.gmra.mxu2 %vm350_vm6, %v4857_v48  ;;  %v3335_v10 = vor.u32 %v4386_v31, %v3332_v60  ;;  %v3414_v25 = vld [vmem:[#allocation2 + $0x220] sm:$0xf]  ;;  %v3507_v28 = vor.u32 %v4429_v22, %v3506_v20  ;;  %v4387_v38 = vld [vmem:[#allocation2 + $0x18c] sm:$0xf]  ;;  %v4402_v45 = vld [vmem:[#allocation2 + $0x204] sm:$0xf]  ;;  %v3399_v54 = vor.u32 %v4404_v37, %v3398_v33 }
 0x18c   :  { %803 = vmatpush.bf16.msrb.mxu2 %v3379_v8  ;;  %3325 = vmatmul.msk.bf16.vlgmr.msra.gmra.mxu3 %vm350_vm6, %v4857_v48  ;;  %v4395_v8 = vld [vmem:[#allocation2 + $0x1cc] sm:$0xf]  ;;  %v3400_v46 = vld [vmem:[#allocation2 + $0x210] sm:$0xf0]  ;;  %v3514_v50 = vld [vmem:[#allocation2 + $0x2e0] sm:$0xf] }
 0x18d   :  { %816 = vmatpush.bf16.msrb.mxu3 %v3383_v26  ;;  %3394 = vmatmul.msk.bf16.vlgmr.msrb.gmra.mxu0 %vm350_vm6, %v4868_v40  ;;  %v3375_v17 = vor.u32 %v4395_v8, %v3372_v9  ;;  %v4408_v26 = vld [vmem:[#allocation2 + $0x22c] sm:$0xf0]  ;;  %v4415_v52 = vld [vmem:[#allocation2 + $0x26c] sm:$0xf]  ;;  %v3456_v21 = vld [vmem:[#allocation2 + $0x278] sm:$0xf0] }
 0x18e   :  { %985 = vmatpush.bf16.msra.mxu0 %v3455_v27  ;;  %v3435_v27 = vor.u32 %v4410_v14, %v3432_v18  ;;  %v3415_v34 = vor.u32 %v4408_v26, %v3414_v25  ;;  %v4432_v51 = vld [vmem:[#allocation2 + $0x2ec] sm:$0xf0]  ;;  %v4430_v53 = vld [vmem:[#allocation2 + $0x2e4] sm:$0xf]  ;;  %v3590_v56 = vld [vmem:[#allocation2 + $0x368] sm:$0xf]  ;;  %v3459_v60 = vor.u32 %v4415_v52, %v3456_v21 }
 0x18f   :  { %686 = vmatpush.bf16.msrb.mxu1 %v3307_v30  ;;  %v3490_v30 = vld [vmem:[#allocation2 + $0x2a8] sm:$0xf]  ;;  %v4449_v57 = vld [vmem:[#allocation2 + $0x374] sm:$0xf0]  ;;  %v3515_v31 = vor.u32 %v4432_v51, %v3514_v50  ;;  %v3498_v61 = vld [vmem:[#allocation2 + $0x2c0] sm:$0xf] }
 0x190   :  { %804 = vmatpush.bf16.msrb.mxu2 %v3363_v29  ;;  %v3356_v29 = vld [vmem:[#allocation2 + $0x1b8] sm:$0xf0]  ;;  %v3491_v44 = vor.u32 %v4425_v23, %v3490_v30  ;;  %v3591_v1 = vor.u32 %v4449_v57, %v3590_v56  ;;  %v4411_v32 = vld [vmem:[#allocation2 + $0x24c] sm:$0xf]  ;;  %v3500_v4 = vld [vmem:[#allocation2 + $0x2d0] sm:$0xf0] }
 0x191   :  { %817 = vmatpush.bf16.msrb.mxu3 %v3367_v41  ;;  %v3359_v36 = vor.u32 %v4391_v15, %v3356_v29  ;;  %v3340_v41 = vld [vmem:[#allocation2 + $0x198] sm:$0xf0]  ;;  %v3574_v5 = vld [vmem:[#allocation2 + $0x348] sm:$0xf]  ;;  %v4445_v6 = vld [vmem:[#allocation2 + $0x354] sm:$0xf0] }
 0x192   :  { %986 = vmatpush.bf16.msra.mxu0 %v3439_v42  ;;  %v3419_v42 = vor.u32 %v4406_v19, %v3416_v24  ;;  %v3343_v55 = vor.u32 %v4387_v38, %v3340_v41  ;;  %v4407_v14 = vld [vmem:[#allocation2 + $0x22c] sm:$0xf]  ;;  %v3484_v18 = vld [vmem:[#allocation2 + $0x2b0] sm:$0xf0]  ;;  %v3558_v20 = vld [vmem:[#allocation2 + $0x328] sm:$0xf] }
 0x193   :  { %687 = vmatpush.bf16.msrb.mxu1 %v3291_v49  ;;  %v4421_v49 = vld [vmem:[#allocation2 + $0x294] sm:$0xf0]  ;;  %v3466_v26 = vld [vmem:[#allocation2 + $0x280] sm:$0xf]  ;;  %v4420_v15 = vld [vmem:[#allocation2 + $0x28c] sm:$0xf0] }
 0x194   :  { %805 = vmatpush.bf16.msrb.mxu2 %v3347_v47  ;;  %v3474_v47 = vld [vmem:[#allocation2 + $0x288] sm:$0xf]  ;;  %v4441_v22 = vld [vmem:[#allocation2 + $0x334] sm:$0xf0]  ;;  %v4403_v29 = vld [vmem:[#allocation2 + $0x20c] sm:$0xf] }
 0x195   :  { %818 = vmatpush.bf16.msrb.mxu3 %v3351_v58  ;;  %v3403_v58 = vor.u32 %v4402_v45, %v3400_v46  ;;  %v3408_v19 = vld [vmem:[#allocation2 + $0x218] sm:$0xf0]  ;;  %v3559_v30 = vor.u32 %v4441_v22, %v3558_v20  ;;  %v4418_v23 = vld [vmem:[#allocation2 + $0x284] sm:$0xf]  ;;  %v3468_v33 = vld [vmem:[#allocation2 + $0x290] sm:$0xf0]  ;;  %v3467_v45 = vor.u32 %v4420_v15, %v3466_v26 }
 0x196   :  { %987 = vmatpush.bf16.msra.mxu0 %v3423_v59  ;;  %v3475_v59 = vor.u32 %v4421_v49, %v3474_v47  ;;  %v3582_v37 = vld [vmem:[#allocation2 + $0x360] sm:$0xf]  ;;  %v4448_v38 = vld [vmem:[#allocation2 + $0x36c] sm:$0xf0]  ;;  %v4431_v41 = vld [vmem:[#allocation2 + $0x2ec] sm:$0xf]  ;;  %v3411_v46 = vor.u32 %v4403_v29, %v3408_v19  ;;  %v3471_v50 = vor.u32 %v4418_v23, %v3468_v33 }
 0x197   :  { %688 = vmatpush.bf16.msrb.mxu1 %v3275_v63  ;;  %v1029_v63 = vunpack.c.l.b16 %v4836_v35  ;;  %v3658_v47 = vld [vmem:[#allocation2 + $0x3e8] sm:$0xf]  ;;  %v4465_v49 = vld [vmem:[#allocation2 + $0x3f4] sm:$0xf0]  ;;  %v3583_v52 = vor.u32 %v4448_v38, %v3582_v37  ;;  %v4427_v56 = vld [vmem:[#allocation2 + $0x2cc] sm:$0xf] }
 0x198   :  { %806 = vmatpush.bf16.msrb.mxu2 %v3331_v62  ;;  %v4428_v62 = vld [vmem:[#allocation2 + $0x2cc] sm:$0xf0]  ;;  %v3508_v57 = vld [vmem:[#allocation2 + $0x2d8] sm:$0xf0]  ;;  %v4434_v20 = vld [vmem:[#allocation2 + $0x304] sm:$0xf] }
 0x199   :  { %819 = vmatpush.bf16.msrb.mxu3 %v3335_v10  ;;  %v3499_v7 = vor.u32 %v4428_v62, %v3498_v61  ;;  %v4887_v9 = vpack.c.b16 %v1029_v63, %v1029_v63  ;;  %v3511_v62 = vor.u32 %v4427_v56, %v3508_v57  ;;  %v3536_v22 = vld [vmem:[#allocation2 + $0x310] sm:$0xf0]  ;;  %v3610_v26 = vld [vmem:[#allocation2 + $0x388] sm:$0xf]  ;;  %v4464_v15 = vld [vmem:[#allocation2 + $0x3ec] sm:$0xf0] }
 0x19a   :  { %988 = vmatpush.bf16.msra.mxu0 %v3407_v11  ;;  %3327 = vmatmul.msk.bf16.vlgmr.msrb.gmra.mxu1 %vm350_vm6, %v4857_v48  ;;  %v3516_v48 = vld [vmem:[#allocation2 + $0x2f0] sm:$0xf0]  ;;  %v3575_v11 = vor.u32 %v4445_v6, %v3574_v5  ;;  %v3626_v6 = vld [vmem:[#allocation2 + $0x3a8] sm:$0xf]  ;;  %v4447_v29 = vld [vmem:[#allocation2 + $0x36c] sm:$0xf] }
 0x19b   :  { %842 = vmatpush.bf16.msra.mxu1 %v3391_v3  ;;  %3392 = vmatmul.msk.bf16.vlgmr.msrb.gmra.mxu2 %vm350_vm6, %v4868_v40  ;;  %v3519_v0 = vor.u32 %v4430_v53, %v3516_v48  ;;  %v4426_v3 = vld [vmem:[#allocation2 + $0x2c4] sm:$0xf]  ;;  %v4890_v25 = vrot.slane %v4887_v9, 1  ;;  %v3566_v53 = vld [vmem:[#allocation2 + $0x340] sm:$0xf]  ;;  %v3659_v48 = vor.u32 %v4465_v49, %v3658_v47  ;;  %vm3083_vm9 = vcmask 74752  }
 0x19c   :  { %959 = vmatpush.bf16.msra.mxu2 %v3447_v2  ;;  %3393 = vmatmul.msk.bf16.vlgmr.msrb.gmra.mxu3 %vm350_vm6, %v4868_v40  ;;  %v3440_v2 = vld [vmem:[#allocation2 + $0x258] sm:$0xf0]  ;;  %v3503_v10 = vor.u32 %v4426_v3, %v3500_v4  ;;  %v4438_v4 = vld [vmem:[#allocation2 + $0x324] sm:$0xf]  ;;  %v3552_v5 = vld [vmem:[#allocation2 + $0x330] sm:$0xf0] }
 0x19d   :  { %972 = vmatpush.bf16.msra.mxu3 %v3451_v12  ;;  %3462 = vmatmul.msk.bf16.vlgmr.msra.gmra.mxu0 %vm350_vm6, %v4836_v35  ;;  %v3443_v8 = vor.u32 %v4411_v32, %v3440_v2  ;;  %v3482_v12 = vld [vmem:[#allocation2 + $0x2a0] sm:$0xf]  ;;  %v4440_v32 = vld [vmem:[#allocation2 + $0x32c] sm:$0xf0]  ;;  %v4423_v2 = vld [vmem:[#allocation2 + $0x2ac] sm:$0xf] }
 0x19e   :  { %1145 = vmatpush.bf16.msrb.mxu0 %v3523_v13  ;;  %v4424_v13 = vld [vmem:[#allocation2 + $0x2ac] sm:$0xf0]  ;;  %v3492_v3 = vld [vmem:[#allocation2 + $0x2b8] sm:$0xf0]  ;;  %v3726_v33 = vld [vmem:[#allocation2 + $0x468] sm:$0xf] }
 0x19f   :  { %843 = vmatpush.bf16.msra.mxu1 %v3375_v17  ;;  %v4422_v17 = vld [vmem:[#allocation2 + $0x2a4] sm:$0xf]  ;;  %v3592_v19 = vld [vmem:[#allocation2 + $0x378] sm:$0xf0]  ;;  %v4456_v56 = vld [vmem:[#allocation2 + $0x3ac] sm:$0xf0] }
 0x1a0   :  { %960 = vmatpush.bf16.msra.mxu2 %v3431_v16  ;;  %v3424_v16 = vld [vmem:[#allocation2 + $0x238] sm:$0xf0]  ;;  %v3487_v24 = vor.u32 %v4422_v17, %v3484_v18  ;;  %v3555_v17 = vor.u32 %v4438_v4, %v3552_v5  ;;  %v4458_v49 = vld [vmem:[#allocation2 + $0x3c4] sm:$0xf]  ;;  %v4439_v57 = vld [vmem:[#allocation2 + $0x32c] sm:$0xf] }
 0x1a1   :  { %973 = vmatpush.bf16.msra.mxu3 %v3435_v27  ;;  %v3483_v27 = vor.u32 %v4424_v13, %v3482_v12  ;;  %v3495_v12 = vor.u32 %v4423_v2, %v3492_v3  ;;  %v4436_v13 = vld [vmem:[#allocation2 + $0x30c] sm:$0xf0]  ;;  %v3576_v47 = vld [vmem:[#allocation2 + $0x358] sm:$0xf0]  ;;  %v4435_v2 = vld [vmem:[#allocation2 + $0x30c] sm:$0xf] }
 0x1a2   :  { %1146 = vmatpush.bf16.msrb.mxu0 %v3507_v28  ;;  %v3427_v28 = vor.u32 %v4407_v14, %v3424_v16  ;;  %v4419_v14 = vld [vmem:[#allocation2 + $0x28c] sm:$0xf]  ;;  %v3476_v16 = vld [vmem:[#allocation2 + $0x298] sm:$0xf0]  ;;  %s3104_s14 = sshll.u32 %s5239_s11, 4  ;;  %s3105_s14 = int_to_ptr.hbm [resolvable:$true] %s3104_s14 }
 0x1a3   :  { %844 = vmatpush.bf16.msra.mxu1 %v3359_v36  ;;  %v4437_v36 = vld [vmem:[#allocation2 + $0x314] sm:$0xf0]  ;;  %v3479_v23 = vor.u32 %v4419_v14, %v3476_v16  ;;  %v3544_v3 = vld [vmem:[#allocation2 + $0x318] sm:$0xf0]  ;;  %v4478_v16 = vld [vmem:[#allocation2 + $0x464] sm:$0xf] }
 0x1a4   :  { %961 = vmatpush.bf16.msra.mxu2 %v3415_v34  ;;  %v3542_v34 = vld [vmem:[#allocation2 + $0x308] sm:$0xf]  ;;  %v3660_v14 = vld [vmem:[#allocation2 + $0x3f8] sm:$0xf0] }
 0x1a5   :  { %974 = vmatpush.bf16.msra.mxu3 %v3419_v42  ;;  %v3524_v42 = vld [vmem:[#allocation2 + $0x2f8] sm:$0xf0]  ;;  %v3543_v51 = vor.u32 %v4437_v36, %v3542_v34  ;;  %v4481_v34 = vld [vmem:[#allocation2 + $0x474] sm:$0xf0]  ;;  %v3539_v36 = vor.u32 %v4434_v20, %v3536_v22  ;;  %v3794_v20 = vld [vmem:[#allocation2 + $0x4e8] sm:$0xf] }
 0x1a6   :  { %1147 = vmatpush.bf16.msrb.mxu0 %v3491_v44  ;;  %v4446_v44 = vld [vmem:[#allocation2 + $0x364] sm:$0xf]  ;;  %v3527_v21 = vor.u32 %v4431_v41, %v3524_v42  ;;  %v3595_v41 = vor.u32 %v4447_v29, %v3592_v19  ;;  %v3634_v42 = vld [vmem:[#allocation2 + $0x3c0] sm:$0xf]  ;;  %v4497_v22 = vld [vmem:[#allocation2 + $0x4f4] sm:$0xf0] }
 0x1a7   :  { %845 = vmatpush.bf16.msra.mxu1 %v3343_v55  ;;  %v3702_v29 = vld [vmem:[#allocation2 + $0x440] sm:$0xf]  ;;  %v4476_v19 = vld [vmem:[#allocation2 + $0x44c] sm:$0xf0] }
 0x1a8   :  { %962 = vmatpush.bf16.msra.mxu2 %v3399_v54  ;;  %v4444_v54 = vld [vmem:[#allocation2 + $0x34c] sm:$0xf0] }
 0x1a9   :  { %975 = vmatpush.bf16.msra.mxu3 %v3403_v58  ;;  %v4442_v58 = vld [vmem:[#allocation2 + $0x344] sm:$0xf]  ;;  %v3567_v61 = vor.u32 %v4444_v54, %v3566_v53 }
 0x1aa   :  { %1148 = vmatpush.bf16.msrb.mxu0 %v3475_v59  ;;  %3395 = vmatmul.msk.bf16.vlgmr.msra.gmra.mxu1 %vm350_vm6, %v4868_v40  ;;  %v3584_v40 = vld [vmem:[#allocation2 + $0x370] sm:$0xf0] }
 0x1ab   :  { %998 = vmatpush.bf16.msrb.mxu1 %v3459_v60  ;;  %3460 = vmatmul.msk.bf16.vlgmr.msra.gmra.mxu2 %vm350_vm6, %v4836_v35  ;;  %v3587_v55 = vor.u32 %v4446_v44, %v3584_v40  ;;  %v3568_v59 = vld [vmem:[#allocation2 + $0x350] sm:$0xf0]  ;;  %v4461_v60 = vld [vmem:[#allocation2 + $0x3d4] sm:$0xf0]  ;;  %v4460_v44 = vld [vmem:[#allocation2 + $0x3cc] sm:$0xf0] }
 0x1ac   :  { %1119 = vmatpush.bf16.msrb.mxu2 %v3515_v31  ;;  %3461 = vmatmul.msk.bf16.vlgmr.msra.gmra.mxu3 %vm350_vm6, %v4836_v35  ;;  %v3642_v31 = vld [vmem:[#allocation2 + $0x3c8] sm:$0xf]  ;;  %v3571_v63 = vor.u32 %v4442_v58, %v3568_v59  ;;  %v4443_v40 = vld [vmem:[#allocation2 + $0x34c] sm:$0xf]  ;;  %v3560_v58 = vld [vmem:[#allocation2 + $0x338] sm:$0xf0] }
 0x1ad   :  { %1132 = vmatpush.bf16.msrb.mxu3 %v3519_v0  ;;  %3530 = vmatmul.msk.bf16.vlgmr.msrb.gmra.mxu0 %vm350_vm6, %v4890_v25  ;;  %v3643_v0 = vor.u32 %v4461_v60, %v3642_v31  ;;  %v3579_v53 = vor.u32 %v4443_v40, %v3576_v47  ;;  %v4454_v59 = vld [vmem:[#allocation2 + $0x3a4] sm:$0xf]  ;;  %v3620_v31 = vld [vmem:[#allocation2 + $0x3b0] sm:$0xf0]  ;;  %v3694_v60 = vld [vmem:[#allocation2 + $0x428] sm:$0xf] }
 0x1ae   :  { %1302 = vmatpush.bf16.msra.mxu0 %v3591_v1  ;;  %v3550_v1 = vld [vmem:[#allocation2 + $0x320] sm:$0xf]  ;;  %v3623_v4 = vor.u32 %v4454_v59, %v3620_v31  ;;  %v4455_v40 = vld [vmem:[#allocation2 + $0x3ac] sm:$0xf]  ;;  %v3628_v47 = vld [vmem:[#allocation2 + $0x3b8] sm:$0xf0] }
 0x1af   :  { %999 = vmatpush.bf16.msrb.mxu1 %v3443_v8  ;;  %v4901_v8 = vrot.slane %v4887_v9, 2  ;;  %v4466_v59 = vld [vmem:[#allocation2 + $0x404] sm:$0xf]  ;;  %v3672_v31 = vld [vmem:[#allocation2 + $0x410] sm:$0xf0] }
 0x1b0   :  { %1120 = vmatpush.bf16.msrb.mxu2 %v3499_v7  ;;  %v4457_v7 = vld [vmem:[#allocation2 + $0x3b4] sm:$0xf0] }
 0x1b1   :  { %1133 = vmatpush.bf16.msrb.mxu3 %v3503_v10  ;;  %v3534_v10 = vld [vmem:[#allocation2 + $0x300] sm:$0xf]  ;;  %v3627_v18 = vor.u32 %v4457_v7, %v3626_v6  ;;  %v4450_v6 = vld [vmem:[#allocation2 + $0x384] sm:$0xf]  ;;  %v3604_v7 = vld [vmem:[#allocation2 + $0x390] sm:$0xf0] }
 0x1b2   :  { %1303 = vmatpush.bf16.msra.mxu0 %v3575_v11  ;;  %v3551_v11 = vor.u32 %v4440_v32, %v3550_v1  ;;  %v3563_v1 = vor.u32 %v4439_v57, %v3560_v58  ;;  %v4452_v32 = vld [vmem:[#allocation2 + $0x38c] sm:$0xf0] }
 0x1b3   :  { %1000 = vmatpush.bf16.msrb.mxu1 %v3427_v28  ;;  %v3650_v28 = vld [vmem:[#allocation2 + $0x3e0] sm:$0xf] }
 0x1b4   :  { %1121 = vmatpush.bf16.msrb.mxu2 %v3483_v27  ;;  %v4453_v27 = vld [vmem:[#allocation2 + $0x394] sm:$0xf0]  ;;  %v3651_v38 = vor.u32 %v4464_v15, %v3650_v28 }
 0x1b5   :  { %1134 = vmatpush.bf16.msrb.mxu3 %v3487_v24  ;;  %v4462_v24 = vld [vmem:[#allocation2 + $0x3e4] sm:$0xf]  ;;  %v3611_v37 = vor.u32 %v4453_v27, %v3610_v26  ;;  %v3607_v26 = vor.u32 %v4450_v6, %v3604_v7  ;;  %v4513_v6 = vld [vmem:[#allocation2 + $0x574] sm:$0xf0]  ;;  %v3675_v7 = vor.u32 %v4466_v59, %v3672_v31 }
 0x1b6   :  { %1304 = vmatpush.bf16.msra.mxu0 %v3559_v30  ;;  %v3535_v30 = vor.u32 %v4436_v13, %v3534_v10  ;;  %v3678_v10 = vld [vmem:[#allocation2 + $0x408] sm:$0xf]  ;;  %v4463_v13 = vld [vmem:[#allocation2 + $0x3ec] sm:$0xf]  ;;  %v4510_v59 = vld [vmem:[#allocation2 + $0x564] sm:$0xf] }
 0x1b7   :  { %1001 = vmatpush.bf16.msrb.mxu1 %v3411_v46  ;;  %v3727_v46 = vor.u32 %v4481_v34, %v3726_v33  ;;  %v3663_v15 = vor.u32 %v4463_v13, %v3660_v14  ;;  %v4474_v33 = vld [vmem:[#allocation2 + $0x444] sm:$0xf]  ;;  %v3704_v34 = vld [vmem:[#allocation2 + $0x450] sm:$0xf0]  ;;  %v4492_v13 = vld [vmem:[#allocation2 + $0x4cc] sm:$0xf0]  ;;  %v1659_v14 = vunpack.c.l.b16 %v4838_v39 }
 0x1b8   :  { %1122 = vmatpush.bf16.msrb.mxu2 %v3467_v45 }
 0x1b9   :  { %1135 = vmatpush.bf16.msrb.mxu3 %v3471_v50  ;;  %v3636_v50 = vld [vmem:[#allocation2 + $0x3d0] sm:$0xf0] }
 0x1ba   :  { %1305 = vmatpush.bf16.msra.mxu0 %v3543_v51  ;;  %3463 = vmatmul.msk.bf16.vlgmr.msrb.gmra.mxu1 %vm350_vm6, %v4836_v35  ;;  %v3652_v35 = vld [vmem:[#allocation2 + $0x3f0] sm:$0xf0]  ;;  %v3710_v51 = vld [vmem:[#allocation2 + $0x448] sm:$0xf]  ;;  %v3639_v54 = vor.u32 %v4458_v49, %v3636_v50  ;;  %v4470_v49 = vld [vmem:[#allocation2 + $0x424] sm:$0xf] }
 0x1bb   :  { %1158 = vmatpush.bf16.msra.mxu1 %v3527_v21  ;;  %3528 = vmatmul.msk.bf16.vlgmr.msrb.gmra.mxu2 %vm350_vm6, %v4890_v25  ;;  %v3655_v45 = vor.u32 %v4462_v24, %v3652_v35  ;;  %v3635_v21 = vor.u32 %v4460_v44, %v3634_v42  ;;  %v3644_v35 = vld [vmem:[#allocation2 + $0x3d8] sm:$0xf0]  ;;  %v3707_v42 = vor.u32 %v4474_v33, %v3704_v34  ;;  %v3688_v50 = vld [vmem:[#allocation2 + $0x430] sm:$0xf0]  ;;  %v4486_v34 = vld [vmem:[#allocation2 + $0x4a4] sm:$0xf] }
 0x1bc   :  { %1276 = vmatpush.bf16.msra.mxu2 %v3583_v52  ;;  %3529 = vmatmul.msk.bf16.vlgmr.msrb.gmra.mxu3 %vm350_vm6, %v4890_v25  ;;  %v4477_v52 = vld [vmem:[#allocation2 + $0x454] sm:$0xf0]  ;;  %v3691_v57 = vor.u32 %v4470_v49, %v3688_v50  ;;  %v3696_v33 = vld [vmem:[#allocation2 + $0x438] sm:$0xf0]  ;;  %v4467_v49 = vld [vmem:[#allocation2 + $0x40c] sm:$0xf] }
 0x1bd   :  { %1289 = vmatpush.bf16.msra.mxu3 %v3587_v55  ;;  %3598 = vmatmul.msk.bf16.vlgmr.msra.gmra.mxu0 %vm350_vm6, %v4901_v8  ;;  %v3711_v55 = vor.u32 %v4477_v52, %v3710_v51  ;;  %v3762_v51 = vld [vmem:[#allocation2 + $0x4a8] sm:$0xf]  ;;  %v4489_v52 = vld [vmem:[#allocation2 + $0x4b4] sm:$0xf0]  ;;  %v3680_v50 = vld [vmem:[#allocation2 + $0x418] sm:$0xf0] }
 0x1be   :  { %1459 = vmatpush.bf16.msrb.mxu0 %v3659_v48  ;;  %v3618_v48 = vld [vmem:[#allocation2 + $0x3a0] sm:$0xf]  ;;  %v3763_v58 = vor.u32 %v4489_v52, %v3762_v51 }
 0x1bf   :  { %1159 = vmatpush.bf16.msra.mxu1 %v3511_v62  ;;  %v4912_v62 = vrot.slane %v4887_v9, 3  ;;  %v4469_v9 = vld [vmem:[#allocation2 + $0x414] sm:$0xf0] }
 0x1c0   :  { %1277 = vmatpush.bf16.msra.mxu2 %v3567_v61  ;;  %v4473_v61 = vld [vmem:[#allocation2 + $0x434] sm:$0xf0]  ;;  %v3679_v27 = vor.u32 %v4469_v9, %v3678_v10 }
 0x1c1   :  { %1290 = vmatpush.bf16.msra.mxu3 %v3571_v63  ;;  %v3602_v63 = vld [vmem:[#allocation2 + $0x380] sm:$0xf]  ;;  %v3695_v5 = vor.u32 %v4473_v61, %v3694_v60  ;;  %v3746_v60 = vld [vmem:[#allocation2 + $0x488] sm:$0xf]  ;;  %v4485_v61 = vld [vmem:[#allocation2 + $0x494] sm:$0xf0] }
 0x1c2   :  { %1460 = vmatpush.bf16.msrb.mxu0 %v3643_v0  ;;  %v3619_v0 = vor.u32 %v4456_v56, %v3618_v48  ;;  %v4451_v48 = vld [vmem:[#allocation2 + $0x38c] sm:$0xf]  ;;  %v3612_v56 = vld [vmem:[#allocation2 + $0x398] sm:$0xf0]  ;;  %v3747_v10 = vor.u32 %v4485_v61, %v3746_v60  ;;  %v3683_v60 = vor.u32 %v4467_v49, %v3680_v50  ;;  %v3930_v61 = vld [vmem:[#allocation2 + $0x5e8] sm:$0xf] }
 0x1c3   :  { %1160 = vmatpush.bf16.msra.mxu1 %v3495_v12  ;;  %v4480_v12 = vld [vmem:[#allocation2 + $0x46c] sm:$0xf0]  ;;  %v3748_v49 = vld [vmem:[#allocation2 + $0x498] sm:$0xf0] }
 0x1c4   :  { %1278 = vmatpush.bf16.msra.mxu2 %v3551_v11  ;;  %v3718_v11 = vld [vmem:[#allocation2 + $0x460] sm:$0xf] }
 0x1c5   :  { %1291 = vmatpush.bf16.msra.mxu3 %v3555_v17  ;;  %v3603_v17 = vor.u32 %v4452_v32, %v3602_v63  ;;  %v3719_v28 = vor.u32 %v4480_v12, %v3718_v11  ;;  %v3786_v63 = vld [vmem:[#allocation2 + $0x4e0] sm:$0xf]  ;;  %v3728_v32 = vld [vmem:[#allocation2 + $0x478] sm:$0xf0] }
 0x1c6   :  { %1461 = vmatpush.bf16.msrb.mxu0 %v3627_v18  ;;  %v3547_v18 = vor.u32 %v4435_v2, %v3544_v3  ;;  %v4494_v2 = vld [vmem:[#allocation2 + $0x4e4] sm:$0xf]  ;;  %v3770_v12 = vld [vmem:[#allocation2 + $0x4c0] sm:$0xf] }
 0x1c7   :  { %1161 = vmatpush.bf16.msra.mxu1 %v3479_v23  ;;  %v4459_v23 = vld [vmem:[#allocation2 + $0x3cc] sm:$0xf] }
 0x1c8   :  { %1279 = vmatpush.bf16.msra.mxu2 %v3535_v30  ;;  %v3795_v30 = vor.u32 %v4497_v22, %v3794_v20  ;;  %v4490_v20 = vld [vmem:[#allocation2 + $0x4c4] sm:$0xf]  ;;  %v3772_v22 = vld [vmem:[#allocation2 + $0x4d0] sm:$0xf0] }
 0x1c9   :  { %1292 = vmatpush.bf16.msra.mxu3 %v3539_v36  ;;  %v3778_v36 = vld [vmem:[#allocation2 + $0x4c8] sm:$0xf] }
 0x1ca   :  { %1462 = vmatpush.bf16.msrb.mxu0 %v3611_v37  ;;  %3531 = vmatmul.msk.bf16.vlgmr.msra.gmra.mxu1 %vm350_vm6, %v4890_v25  ;;  %v3720_v25 = vld [vmem:[#allocation2 + $0x470] sm:$0xf0]  ;;  %v4493_v37 = vld [vmem:[#allocation2 + $0x4d4] sm:$0xf0] }
 0x1cb   :  { %1315 = vmatpush.bf16.msrb.mxu1 %v3595_v41  ;;  %3596 = vmatmul.msk.bf16.vlgmr.msra.gmra.mxu2 %vm350_vm6, %v4901_v8  ;;  %v3723_v24 = vor.u32 %v4478_v16, %v3720_v25  ;;  %v3647_v41 = vor.u32 %v4459_v23, %v3644_v35  ;;  %v3779_v44 = vor.u32 %v4493_v37, %v3778_v36  ;;  %v3712_v25 = vld [vmem:[#allocation2 + $0x458] sm:$0xf0]  ;;  %v4488_v23 = vld [vmem:[#allocation2 + $0x4ac] sm:$0xf0]  ;;  %v4471_v35 = vld [vmem:[#allocation2 + $0x42c] sm:$0xf] }
 0x1cc   :  { %1433 = vmatpush.bf16.msrb.mxu2 %v3651_v38  ;;  %3597 = vmatmul.msk.bf16.vlgmr.msra.gmra.mxu3 %vm350_vm6, %v4901_v8  ;;  %v3703_v38 = vor.u32 %v4476_v19, %v3702_v29  ;;  %v4931_v29 = vpack.c.b16 %v1659_v14, %v1659_v14  ;;  %v3775_v19 = vor.u32 %v4490_v20, %v3772_v22  ;;  %v3756_v37 = vld [vmem:[#allocation2 + $0x4b0] sm:$0xf0] }
 0x1cd   :  { %1446 = vmatpush.bf16.msrb.mxu3 %v3655_v45  ;;  %3666 = vmatmul.msk.bf16.vlgmr.msrb.gmra.mxu0 %vm350_vm6, %v4912_v62  ;;  %v3686_v45 = vld [vmem:[#allocation2 + $0x420] sm:$0xf]  ;;  %v3759_v51 = vor.u32 %v4486_v34, %v3756_v37  ;;  %v4521_v34 = vld [vmem:[#allocation2 + $0x5b4] sm:$0xf0] }
 0x1ce   :  { %1615 = vmatpush.bf16.msra.mxu0 %v3727_v46  ;;  %v4472_v46 = vld [vmem:[#allocation2 + $0x42c] sm:$0xf0] }
 0x1cf   :  { %1316 = vmatpush.bf16.msrb.mxu1 %v3579_v53  ;;  %v3687_v53 = vor.u32 %v4472_v46, %v3686_v45 }
 0x1d0   :  { %1434 = vmatpush.bf16.msrb.mxu2 %v3635_v21  ;;  %v3670_v21 = vld [vmem:[#allocation2 + $0x400] sm:$0xf] }
 0x1d1   :  { %1447 = vmatpush.bf16.msrb.mxu3 %v3639_v54  ;;  %v3631_v54 = vor.u32 %v4455_v40, %v3628_v47  ;;  %v3699_v40 = vor.u32 %v4471_v35, %v3696_v33  ;;  %v4484_v47 = vld [vmem:[#allocation2 + $0x48c] sm:$0xf0]  ;;  %v3824_v35 = vld [vmem:[#allocation2 + $0x530] sm:$0xf0]  ;;  %v3898_v33 = vld [vmem:[#allocation2 + $0x5a8] sm:$0xf] }
 0x1d2   :  { %1616 = vmatpush.bf16.msra.mxu0 %v3711_v55  ;;  %v4468_v55 = vld [vmem:[#allocation2 + $0x40c] sm:$0xf0] }
 0x1d3   :  { %1317 = vmatpush.bf16.msrb.mxu1 %v3563_v1  ;;  %v4479_v1 = vld [vmem:[#allocation2 + $0x46c] sm:$0xf]  ;;  %v3671_v3 = vor.u32 %v4468_v55, %v3670_v21  ;;  %v4482_v21 = vld [vmem:[#allocation2 + $0x484] sm:$0xf]  ;;  %v4501_v55 = vld [vmem:[#allocation2 + $0x514] sm:$0xf0] }
 0x1d4   :  { %1435 = vmatpush.bf16.msrb.mxu2 %v3619_v0  ;;  %v4496_v0 = vld [vmem:[#allocation2 + $0x4ec] sm:$0xf0]  ;;  %v3731_v11 = vor.u32 %v4479_v1, %v3728_v32 }
 0x1d5   :  { %1448 = vmatpush.bf16.msrb.mxu3 %v3623_v4  ;;  %v3615_v4 = vor.u32 %v4451_v48, %v3612_v56  ;;  %v3787_v9 = vor.u32 %v4496_v0, %v3786_v63  ;;  %v3854_v48 = vld [vmem:[#allocation2 + $0x560] sm:$0xf]  ;;  %v4512_v56 = vld [vmem:[#allocation2 + $0x56c] sm:$0xf0]  ;;  %v4529_v63 = vld [vmem:[#allocation2 + $0x5f4] sm:$0xf0] }
 0x1d6   :  { %1617 = vmatpush.bf16.msra.mxu0 %v3695_v5  ;;  %v3862_v5 = vld [vmem:[#allocation2 + $0x568] sm:$0xf] }
 0x1d7   :  { %1318 = vmatpush.bf16.msrb.mxu1 %v3547_v18  ;;  %v4475_v18 = vld [vmem:[#allocation2 + $0x44c] sm:$0xf] }
 0x1d8   :  { %1436 = vmatpush.bf16.msrb.mxu2 %v3603_v17  ;;  %v3863_v17 = vor.u32 %v4513_v6, %v3862_v5  ;;  %v3838_v6 = vld [vmem:[#allocation2 + $0x540] sm:$0xf] }
 0x1d9   :  { %1449 = vmatpush.bf16.msrb.mxu3 %v3607_v26  ;;  %v3846_v26 = vld [vmem:[#allocation2 + $0x548] sm:$0xf] }
 0x1da   :  { %1618 = vmatpush.bf16.msra.mxu0 %v3679_v27  ;;  %3599 = vmatmul.msk.bf16.vlgmr.msrb.gmra.mxu1 %vm350_vm6, %v4901_v8  ;;  %v3788_v8 = vld [vmem:[#allocation2 + $0x4f0] sm:$0xf0]  ;;  %v4509_v27 = vld [vmem:[#allocation2 + $0x554] sm:$0xf0] }
 0x1db   :  { %1472 = vmatpush.bf16.msra.mxu1 %v3663_v15  ;;  %3664 = vmatmul.msk.bf16.vlgmr.msrb.gmra.mxu2 %vm350_vm6, %v4912_v62  ;;  %v3791_v16 = vor.u32 %v4494_v2, %v3788_v8  ;;  %v3715_v15 = vor.u32 %v4475_v18, %v3712_v25  ;;  %v3855_v8 = vor.u32 %v4512_v56, %v3854_v48  ;;  %v4525_v18 = vld [vmem:[#allocation2 + $0x5d4] sm:$0xf0]  ;;  %v3922_v48 = vld [vmem:[#allocation2 + $0x5e0] sm:$0xf]  ;;  %v4528_v56 = vld [vmem:[#allocation2 + $0x5ec] sm:$0xf0] }
 0x1dc   :  { %1589 = vmatpush.bf16.msra.mxu2 %v3719_v28  ;;  %3665 = vmatmul.msk.bf16.vlgmr.msrb.gmra.mxu3 %vm350_vm6, %v4912_v62  ;;  %v3771_v28 = vor.u32 %v4492_v13, %v3770_v12  ;;  %v3780_v12 = vld [vmem:[#allocation2 + $0x4d8] sm:$0xf0]  ;;  %v4506_v13 = vld [vmem:[#allocation2 + $0x544] sm:$0xf] }
 0x1dd   :  { %1602 = vmatpush.bf16.msra.mxu3 %v3723_v24  ;;  %3734 = vmatmul.msk.bf16.vlgmr.msra.gmra.mxu0 %vm350_vm6, %v4838_v39  ;;  %v3847_v24 = vor.u32 %v4509_v27, %v3846_v26  ;;  %v3822_v27 = vld [vmem:[#allocation2 + $0x520] sm:$0xf] }
 0x1de   :  { %1775 = vmatpush.bf16.msrb.mxu0 %v3795_v30  ;;  %v3754_v30 = vld [vmem:[#allocation2 + $0x4a0] sm:$0xf] }
 0x1df   :  { %1473 = vmatpush.bf16.msra.mxu1 %v3647_v41  ;;  %v4505_v41 = vld [vmem:[#allocation2 + $0x534] sm:$0xf0]  ;;  %v3755_v46 = vor.u32 %v4488_v23, %v3754_v30  ;;  %v3764_v30 = vld [vmem:[#allocation2 + $0x4b8] sm:$0xf0]  ;;  %v4502_v23 = vld [vmem:[#allocation2 + $0x524] sm:$0xf] }
 0x1e0   :  { %1590 = vmatpush.bf16.msra.mxu2 %v3703_v38  ;;  %v3830_v38 = vld [vmem:[#allocation2 + $0x528] sm:$0xf] }
 0x1e1   :  { %1603 = vmatpush.bf16.msra.mxu3 %v3707_v42  ;;  %v4936_v42 = vrot.slane %v4931_v29, 1  ;;  %v3831_v52 = vor.u32 %v4505_v41, %v3830_v38  ;;  %v4951_v38 = vrot.slane %v4931_v29, 2  ;;  %v3806_v41 = vld [vmem:[#allocation2 + $0x500] sm:$0xf] }
 0x1e2   :  { %1776 = vmatpush.bf16.msrb.mxu0 %v3779_v44  ;;  %v3738_v44 = vld [vmem:[#allocation2 + $0x480] sm:$0xf] }
 0x1e3   :  { %1474 = vmatpush.bf16.msra.mxu1 %v3631_v54  ;;  %v3814_v54 = vld [vmem:[#allocation2 + $0x508] sm:$0xf]  ;;  %v3739_v31 = vor.u32 %v4484_v47, %v3738_v44  ;;  %v4483_v47 = vld [vmem:[#allocation2 + $0x48c] sm:$0xf] }
 0x1e4   :  { %1591 = vmatpush.bf16.msra.mxu2 %v3687_v53  ;;  %v3740_v53 = vld [vmem:[#allocation2 + $0x490] sm:$0xf0]  ;;  %v3815_v2 = vor.u32 %v4501_v55, %v3814_v54  ;;  %v3882_v54 = vld [vmem:[#allocation2 + $0x588] sm:$0xf]  ;;  %v4517_v55 = vld [vmem:[#allocation2 + $0x594] sm:$0xf0] }
 0x1e5   :  { %1604 = vmatpush.bf16.msra.mxu3 %v3691_v57  ;;  %v4495_v57 = vld [vmem:[#allocation2 + $0x4ec] sm:$0xf]  ;;  %v3743_v32 = vor.u32 %v4482_v21, %v3740_v53  ;;  %v4498_v21 = vld [vmem:[#allocation2 + $0x504] sm:$0xf]  ;;  %v3808_v53 = vld [vmem:[#allocation2 + $0x510] sm:$0xf0] }
 0x1e6   :  { %1777 = vmatpush.bf16.msrb.mxu0 %v3763_v58  ;;  %v3796_v58 = vld [vmem:[#allocation2 + $0x4f8] sm:$0xf0] }
 0x1e7   :  { %1475 = vmatpush.bf16.msra.mxu1 %v3615_v4  ;;  %v4933_v36 = vpop.f32.mrf.mxu1  ;;  %v3799_v5 = vor.u32 %v4495_v57, %v3796_v58  ;;  %v4511_v57 = vld [vmem:[#allocation2 + $0x56c] sm:$0xf]  ;;  %v3864_v58 = vld [vmem:[#allocation2 + $0x578] sm:$0xf0] }
 0x1e8   :  { %1592 = vmatpush.bf16.msra.mxu2 %v3671_v3 }
 0x1e9   :  { %1605 = vmatpush.bf16.msra.mxu3 %v3675_v7  ;;  %v4508_v7 = vld [vmem:[#allocation2 + $0x54c] sm:$0xf0] }
 0x1ea   :  { %1778 = vmatpush.bf16.msrb.mxu0 %v3747_v10  ;;  %v524_v45 = vpop.f32.mrf.mxu0  ;;  %3667 = vmatmul.msk.bf16.vlgmr.msra.gmra.mxu1 %vm350_vm6, %v4912_v62  ;;  %v3856_v62 = vld [vmem:[#allocation2 + $0x570] sm:$0xf0]  ;;  %v3839_v25 = vor.u32 %v4508_v7, %v3838_v6  ;;  %v4524_v6 = vld [vmem:[#allocation2 + $0x5cc] sm:$0xf0] }
 0x1eb   :  { %1628 = vmatpush.bf16.msrb.mxu1 %v3731_v11  ;;  %3732 = vmatmul.msk.bf16.vlgmr.msra.gmra.mxu2 %vm350_vm6, %v4838_v39  ;;  %v3859_v10 = vor.u32 %v4510_v59, %v3856_v62  ;;  %v4491_v11 = vld [vmem:[#allocation2 + $0x4cc] sm:$0xf]  ;;  %v4526_v59 = vld [vmem:[#allocation2 + $0x5e4] sm:$0xf]  ;;  %v3998_v62 = vld [vmem:[#allocation2 + $0x668] sm:$0xf] }
 0x1ec   :  { %1749 = vmatpush.bf16.msrb.mxu2 %v3787_v9  ;;  %3733 = vmatmul.msk.bf16.vlgmr.msra.gmra.mxu3 %vm350_vm6, %v4838_v39  ;;  %v3931_v9 = vor.u32 %v4529_v63, %v3930_v61  ;;  %v3783_v20 = vor.u32 %v4491_v11, %v3780_v12  ;;  %v4545_v61 = vld [vmem:[#allocation2 + $0x674] sm:$0xf0]  ;;  %v4507_v12 = vld [vmem:[#allocation2 + $0x54c] sm:$0xf] }
 0x1ed   :  { %1762 = vmatpush.bf16.msrb.mxu3 %v3791_v16  ;;  %3802 = vmatmul.msk.bf16.vlgmr.msrb.gmra.mxu0 %vm350_vm6, %v4936_v42  ;;  %v3840_v16 = vld [vmem:[#allocation2 + $0x550] sm:$0xf0]  ;;  %v3999_v11 = vor.u32 %v4545_v61, %v3998_v62  ;;  %v4561_v62 = vld [vmem:[#allocation2 + $0x6f4] sm:$0xf0] }
 0x1ee   :  { %1932 = vmatpush.bf16.msra.mxu0 %v3863_v17  ;;  %v4946_v0 = vpop.f32.mrf.mxu2  ;;  %v3914_v17 = vld [vmem:[#allocation2 + $0x5c8] sm:$0xf]  ;;  %v3843_v22 = vor.u32 %v4506_v13, %v3840_v16  ;;  %v3848_v13 = vld [vmem:[#allocation2 + $0x558] sm:$0xf0] }
 0x1ef   :  { %1629 = vmatpush.bf16.msrb.mxu1 %v3715_v15  ;;  %v389_v1 = vpop.f32.mrf.mxu3  ;;  %v365_v4 = vpop.f32.mrf.mxu1  ;;  %v3915_v26 = vor.u32 %v4525_v18, %v3914_v17  ;;  %v3908_v17 = vld [vmem:[#allocation2 + $0x5d0] sm:$0xf0]  ;;  %v4541_v18 = vld [vmem:[#allocation2 + $0x654] sm:$0xf0] }
 0x1f0   :  { %1750 = vmatpush.bf16.msrb.mxu2 %v3771_v28  ;;  %v525_v3 = vadd.f32 %v524_v45, %v389_v1  ;;  %v4504_v28 = vld [vmem:[#allocation2 + $0x52c] sm:$0xf0]  ;;  %v3811_v1 = vor.u32 %v4498_v21, %v3808_v53  ;;  %v3923_v4 = vor.u32 %v4528_v56, %v3922_v48  ;;  %v3950_v48 = vld [vmem:[#allocation2 + $0x608] sm:$0xf]  ;;  %v3990_v56 = vld [vmem:[#allocation2 + $0x660] sm:$0xf] }
 0x1f1   :  { %1763 = vmatpush.bf16.msrb.mxu3 %v3775_v19  ;;  %v3823_v45 = vor.u32 %v4504_v28, %v3822_v27  ;;  %v4520_v27 = vld [vmem:[#allocation2 + $0x5ac] sm:$0xf0] }
 0x1f2   :  { %1933 = vmatpush.bf16.msra.mxu0 %v3847_v24  ;;  %v526_v14 = vpop.f32.mrf.mxu0  ;;  %v4487_v24 = vld [vmem:[#allocation2 + $0x4ac] sm:$0xf] }
 0x1f3   :  { %1630 = vmatpush.bf16.msrb.mxu1 %v3699_v40  ;;  %v4500_v40 = vld [vmem:[#allocation2 + $0x50c] sm:$0xf0]  ;;  %v4522_v14 = vld [vmem:[#allocation2 + $0x5c4] sm:$0xf] }
 0x1f4   :  { %1751 = vmatpush.bf16.msrb.mxu2 %v3755_v46  ;;  %v3767_v46 = vor.u32 %v4487_v24, %v3764_v30  ;;  %v4518_v24 = vld [vmem:[#allocation2 + $0x5a4] sm:$0xf] }
 0x1f5   :  { %1764 = vmatpush.bf16.msrb.mxu3 %v3759_v51  ;;  %v3827_v51 = vor.u32 %v4502_v23, %v3824_v35  ;;  %v3892_v23 = vld [vmem:[#allocation2 + $0x5b0] sm:$0xf0]  ;;  %v3966_v35 = vld [vmem:[#allocation2 + $0x628] sm:$0xf] }
 0x1f6   :  { %1934 = vmatpush.bf16.msra.mxu0 %v3831_v52  ;;  %v378_v15 = vpop.f32.mrf.mxu2  ;;  %v3899_v52 = vor.u32 %v4521_v34, %v3898_v33  ;;  %v4537_v33 = vld [vmem:[#allocation2 + $0x634] sm:$0xf0]  ;;  %v3895_v53 = vor.u32 %v4518_v24, %v3892_v23  ;;  %v4034_v23 = vld [vmem:[#allocation2 + $0x6a8] sm:$0xf] }
 0x1f7   :  { %1631 = vmatpush.bf16.msrb.mxu1 %v3683_v60  ;;  %v391_v19 = vpop.f32.mrf.mxu3  ;;  %v4948_v37 = vpop.f32.mrf.mxu1  ;;  %v3751_v60 = vor.u32 %v4483_v47, %v3748_v49  ;;  %v4503_v15 = vld [vmem:[#allocation2 + $0x52c] sm:$0xf]  ;;  %v4516_v49 = vld [vmem:[#allocation2 + $0x58c] sm:$0xf0] }
 0x1f8   :  { %1752 = vmatpush.bf16.msrb.mxu2 %v3739_v31  ;;  %v3807_v31 = vor.u32 %v4500_v40, %v3806_v41  ;;  %v3832_v19 = vld [vmem:[#allocation2 + $0x538] sm:$0xf0]  ;;  %v4970_v41 = vrot.slane %v4931_v29, 3  ;;  %v3876_v29 = vld [vmem:[#allocation2 + $0x590] sm:$0xf0] }
 0x1f9   :  { %1765 = vmatpush.bf16.msrb.mxu3 %v3743_v32  ;;  %v3883_v32 = vor.u32 %v4517_v55, %v3882_v54  ;;  %v3835_v47 = vor.u32 %v4503_v15, %v3832_v19  ;;  %v3967_v54 = vor.u32 %v4537_v33, %v3966_v35  ;;  %v4514_v55 = vld [vmem:[#allocation2 + $0x584] sm:$0xf]  ;;  %v3900_v15 = vld [vmem:[#allocation2 + $0x5b8] sm:$0xf0]  ;;  %v4553_v35 = vld [vmem:[#allocation2 + $0x6b4] sm:$0xf0] }
 0x1fa   :  { %1935 = vmatpush.bf16.msra.mxu0 %v3815_v2  ;;  %v677_v44 = vpop.f32.mrf.mxu0  ;;  %3735 = vmatmul.msk.bf16.vlgmr.msrb.gmra.mxu1 %vm350_vm6, %v4838_v39  ;;  %v3924_v39 = vld [vmem:[#allocation2 + $0x5f0] sm:$0xf0]  ;;  %v4534_v19 = vld [vmem:[#allocation2 + $0x624] sm:$0xf] }
 0x1fb   :  { %1788 = vmatpush.bf16.msra.mxu1 %v3799_v5  ;;  %v4953_v50 = vadd.f32 %v677_v44, %v525_v3  ;;  %3800 = vmatmul.msk.bf16.vlgmr.msrb.gmra.mxu2 %vm350_vm6, %v4936_v42  ;;  %v3906_v5 = vld [vmem:[#allocation2 + $0x5c0] sm:$0xf] }
 0x1fc   :  { %1906 = vmatpush.bf16.msra.mxu2 %v3855_v8  ;;  %3801 = vmatmul.msk.bf16.vlgmr.msrb.gmra.mxu3 %vm350_vm6, %v4936_v42  ;;  %v3867_v8 = vor.u32 %v4511_v57, %v3864_v58  ;;  %v3874_v44 = vld [vmem:[#allocation2 + $0x580] sm:$0xf]  ;;  %v4544_v57 = vld [vmem:[#allocation2 + $0x66c] sm:$0xf0]  ;;  %v3932_v58 = vld [vmem:[#allocation2 + $0x5f8] sm:$0xf0] }
 0x1fd   :  { %1919 = vmatpush.bf16.msra.mxu3 %v3859_v10  ;;  %3870 = vmatmul.msk.bf16.vlgmr.msra.gmra.mxu0 %vm350_vm6, %v4951_v38 }
 0x1fe   :  { %2089 = vmatpush.bf16.msrb.mxu0 %v3931_v9  ;;  %v498_v63 = vpop.f32.mrf.mxu2  ;;  %v3927_v9 = vor.u32 %v4526_v59, %v3924_v39  ;;  %v4542_v59 = vld [vmem:[#allocation2 + $0x664] sm:$0xf]  ;;  %v4066_v39 = vld [vmem:[#allocation2 + $0x6e8] sm:$0xf] }
 0x1ff   :  { %1789 = vmatpush.bf16.msra.mxu1 %v3783_v20  ;;  %v4964_v2 = vadd.f32 %v498_v63, %v4933_v36  ;;  %v511_v3 = vpop.f32.mrf.mxu3  ;;  %v404_v10 = vpop.f32.mrf.mxu1  ;;  %v3982_v36 = vld [vmem:[#allocation2 + $0x648] sm:$0xf]  ;;  %v3851_v20 = vor.u32 %v4507_v12, %v3848_v13  ;;  %v3879_v63 = vor.u32 %v4514_v55, %v3876_v29  ;;  %v4067_v12 = vor.u32 %v4561_v62, %v4066_v39  ;;  %v4523_v13 = vld [vmem:[#allocation2 + $0x5cc] sm:$0xf]  ;;  %v4530_v29 = vld [vmem:[#allocation2 + $0x604] sm:$0xf] }
 0x200   :  { %1907 = vmatpush.bf16.msra.mxu2 %v3839_v25  ;;  %v4967_v7 = vadd.f32 %v511_v3, %v4946_v0  ;;  %v3907_v25 = vor.u32 %v4524_v6, %v3906_v5  ;;  %v3911_v0 = vor.u32 %v4522_v14, %v3908_v17  ;;  %v3974_v5 = vld [vmem:[#allocation2 + $0x640] sm:$0xf]  ;;  %v4540_v6 = vld [vmem:[#allocation2 + $0x64c] sm:$0xf0]  ;;  %v3916_v14 = vld [vmem:[#allocation2 + $0x5d8] sm:$0xf0]  ;;  %v4035_v55 = vor.u32 %v4553_v35, %v4034_v23 }
 0x201   :  { %1920 = vmatpush.bf16.msra.mxu3 %v3843_v22  ;;  %v3983_v22 = vor.u32 %v4541_v18, %v3982_v36  ;;  %v3976_v36 = vld [vmem:[#allocation2 + $0x650] sm:$0xf0]  ;;  %v4557_v18 = vld [vmem:[#allocation2 + $0x6d4] sm:$0xf0]  ;;  %v4102_v23 = vld [vmem:[#allocation2 + $0x728] sm:$0xf] }
 0x202   :  { %2090 = vmatpush.bf16.msrb.mxu0 %v3915_v26  ;;  %v679_v16 = vpop.f32.mrf.mxu0  ;;  %v3890_v26 = vld [vmem:[#allocation2 + $0x5a0] sm:$0xf]  ;;  %v4569_v35 = vld [vmem:[#allocation2 + $0x734] sm:$0xf0] }
 0x203   :  { %1790 = vmatpush.bf16.msra.mxu1 %v3767_v46  ;;  %v3891_v40 = vor.u32 %v4520_v27, %v3890_v26  ;;  %v4538_v16 = vld [vmem:[#allocation2 + $0x644] sm:$0xf]  ;;  %v4536_v26 = vld [vmem:[#allocation2 + $0x62c] sm:$0xf0] }
 0x204   :  { %1908 = vmatpush.bf16.msra.mxu2 %v3823_v45 }
 0x205   :  { %1921 = vmatpush.bf16.msra.mxu3 %v3827_v51  ;;  %v4499_v51 = vld [vmem:[#allocation2 + $0x50c] sm:$0xf] }
 0x206   :  { %2091 = vmatpush.bf16.msrb.mxu0 %v3899_v52  ;;  %v500_v28 = vpop.f32.mrf.mxu2  ;;  %v3816_v52 = vld [vmem:[#allocation2 + $0x518] sm:$0xf0] }
 0x207   :  { %1791 = vmatpush.bf16.msra.mxu1 %v3751_v60  ;;  %v513_v30 = vpop.f32.mrf.mxu3  ;;  %v537_v34 = vpop.f32.mrf.mxu1  ;;  %v3819_v60 = vor.u32 %v4499_v51, %v3816_v52  ;;  %v4519_v28 = vld [vmem:[#allocation2 + $0x5ac] sm:$0xf]  ;;  %v3884_v52 = vld [vmem:[#allocation2 + $0x598] sm:$0xf0] }
 0x208   :  { %1909 = vmatpush.bf16.msra.mxu2 %v3807_v31  ;;  %v4973_v45 = vadd.f32 %v537_v34, %v4948_v37  ;;  %v4533_v37 = vld [vmem:[#allocation2 + $0x614] sm:$0xf0]  ;;  %v3875_v31 = vor.u32 %v4516_v49, %v3874_v44  ;;  %v3960_v30 = vld [vmem:[#allocation2 + $0x630] sm:$0xf0]  ;;  %v3942_v34 = vld [vmem:[#allocation2 + $0x600] sm:$0xf] }
 0x209   :  { %1922 = vmatpush.bf16.msra.mxu3 %v3811_v1  ;;  %v3951_v1 = vor.u32 %v4533_v37, %v3950_v48  ;;  %v4532_v49 = vld [vmem:[#allocation2 + $0x60c] sm:$0xf0]  ;;  %v4515_v51 = vld [vmem:[#allocation2 + $0x58c] sm:$0xf]  ;;  %v3944_v48 = vld [vmem:[#allocation2 + $0x610] sm:$0xf0] }
 0x20a   :  { %2092 = vmatpush.bf16.msrb.mxu0 %v3883_v32  ;;  %v834_v46 = vpop.f32.mrf.mxu0  ;;  %3803 = vmatmul.msk.bf16.vlgmr.msra.gmra.mxu1 %vm350_vm6, %v4936_v42  ;;  %v3992_v42 = vld [vmem:[#allocation2 + $0x670] sm:$0xf0]  ;;  %v4018_v37 = vld [vmem:[#allocation2 + $0x688] sm:$0xf]  ;;  %v3947_v62 = vor.u32 %v4530_v29, %v3944_v48 }
 0x20b   :  { %1945 = vmatpush.bf16.msrb.mxu1 %v3867_v8  ;;  %v4976_v21 = vadd.f32 %v834_v46, %v4953_v50  ;;  %3868 = vmatmul.msk.bf16.vlgmr.msra.gmra.mxu2 %vm350_vm6, %v4951_v38  ;;  %v4527_v50 = vld [vmem:[#allocation2 + $0x5ec] sm:$0xf] }
 0x20c   :  { %2063 = vmatpush.bf16.msrb.mxu2 %v3923_v4  ;;  %3869 = vmatmul.msk.bf16.vlgmr.msra.gmra.mxu3 %vm350_vm6, %v4951_v38  ;;  %v3991_v4 = vor.u32 %v4544_v57, %v3990_v56  ;;  %v3935_v8 = vor.u32 %v4527_v50, %v3932_v58  ;;  %v4058_v56 = vld [vmem:[#allocation2 + $0x6e0] sm:$0xf]  ;;  %v4560_v57 = vld [vmem:[#allocation2 + $0x6ec] sm:$0xf0]  ;;  %v4000_v50 = vld [vmem:[#allocation2 + $0x678] sm:$0xf0] }
 0x20d   :  { %2076 = vmatpush.bf16.msrb.mxu3 %v3927_v9  ;;  %3938 = vmatmul.msk.bf16.vlgmr.msrb.gmra.mxu0 %vm350_vm6, %v4970_v41  ;;  %v4558_v58 = vld [vmem:[#allocation2 + $0x6e4] sm:$0xf] }
 0x20e   :  { %2245 = vmatpush.bf16.msra.mxu0 %v3999_v11  ;;  %v651_v61 = vpop.f32.mrf.mxu2  ;;  %v3995_v11 = vor.u32 %v4542_v59, %v3992_v42  ;;  %v3943_v59 = vor.u32 %v4532_v49, %v3942_v34  ;;  %v4577_v42 = vld [vmem:[#allocation2 + $0x774] sm:$0xf0] }
 0x20f   :  { %1946 = vmatpush.bf16.msrb.mxu1 %v3851_v20  ;;  %v4987_v32 = vadd.f32 %v651_v61, %v4964_v2  ;;  %v664_v3 = vpop.f32.mrf.mxu3  ;;  %v539_v9 = vpop.f32.mrf.mxu1  ;;  %v4050_v2 = vld [vmem:[#allocation2 + $0x6c8] sm:$0xf]  ;;  %v3919_v20 = vor.u32 %v4523_v13, %v3916_v14  ;;  %v4539_v14 = vld [vmem:[#allocation2 + $0x64c] sm:$0xf] }
 0x210   :  { %2064 = vmatpush.bf16.msrb.mxu2 %v3907_v25  ;;  %v4990_v10 = vadd.f32 %v664_v3, %v4967_v7  ;;  %v3975_v25 = vor.u32 %v4540_v6, %v3974_v5  ;;  %v3979_v7 = vor.u32 %v4538_v16, %v3976_v36  ;;  %v4059_v3 = vor.u32 %v4560_v57, %v4058_v56  ;;  %v4556_v5 = vld [vmem:[#allocation2 + $0x6cc] sm:$0xf0]  ;;  %v3984_v16 = vld [vmem:[#allocation2 + $0x658] sm:$0xf0]  ;;  %v4012_v56 = vld [vmem:[#allocation2 + $0x690] sm:$0xf0] }
 0x211   :  { %2077 = vmatpush.bf16.msrb.mxu3 %v3911_v0  ;;  %v4051_v0 = vor.u32 %v4557_v18, %v4050_v2  ;;  %v4118_v2 = vld [vmem:[#allocation2 + $0x748] sm:$0xf]  ;;  %v4573_v18 = vld [vmem:[#allocation2 + $0x754] sm:$0xf0] }
 0x212   :  { %2246 = vmatpush.bf16.msra.mxu0 %v3983_v22  ;;  %v836_v17 = vpop.f32.mrf.mxu0  ;;  %v3958_v22 = vld [vmem:[#allocation2 + $0x620] sm:$0xf]  ;;  %v4086_v57 = vld [vmem:[#allocation2 + $0x708] sm:$0xf] }
 0x213   :  { %1947 = vmatpush.bf16.msrb.mxu1 %v3835_v47  ;;  %v3903_v47 = vor.u32 %v4519_v28, %v3900_v15  ;;  %v4554_v17 = vld [vmem:[#allocation2 + $0x6c4] sm:$0xf]  ;;  %v4535_v28 = vld [vmem:[#allocation2 + $0x62c] sm:$0xf]  ;;  %v3968_v15 = vld [vmem:[#allocation2 + $0x638] sm:$0xf0] }
 0x214   :  { %2065 = vmatpush.bf16.msrb.mxu2 %v3891_v40  ;;  %v3959_v40 = vor.u32 %v4536_v26, %v3958_v22  ;;  %v4026_v22 = vld [vmem:[#allocation2 + $0x6a0] sm:$0xf]  ;;  %v4552_v26 = vld [vmem:[#allocation2 + $0x6ac] sm:$0xf0] }
 0x215   :  { %2078 = vmatpush.bf16.msrb.mxu3 %v3895_v53  ;;  %v4027_v49 = vor.u32 %v4552_v26, %v4026_v22  ;;  %v4568_v22 = vld [vmem:[#allocation2 + $0x72c] sm:$0xf0] }
 0x216   :  { %2247 = vmatpush.bf16.msra.mxu0 %v3967_v54  ;;  %v653_v27 = vpop.f32.mrf.mxu2  ;;  %v3963_v54 = vor.u32 %v4534_v19, %v3960_v30  ;;  %v4550_v19 = vld [vmem:[#allocation2 + $0x6a4] sm:$0xf]  ;;  %v4028_v30 = vld [vmem:[#allocation2 + $0x6b0] sm:$0xf0] }
 0x217   :  { %1948 = vmatpush.bf16.msrb.mxu1 %v3819_v60  ;;  %v666_v24 = vpop.f32.mrf.mxu3  ;;  %v690_v33 = vpop.f32.mrf.mxu1  ;;  %v4134_v60 = vld [vmem:[#allocation2 + $0x768] sm:$0xf]  ;;  %v4031_v48 = vor.u32 %v4550_v19, %v4028_v30 }
 0x218   :  { %2066 = vmatpush.bf16.msrb.mxu2 %v3875_v31  ;;  %v4993_v44 = vadd.f32 %v690_v33, %v4973_v45  ;;  %v4549_v45 = vld [vmem:[#allocation2 + $0x694] sm:$0xf0]  ;;  %v3887_v31 = vor.u32 %v4515_v51, %v3884_v52  ;;  %v4135_v13 = vor.u32 %v4577_v42, %v4134_v60  ;;  %v3971_v51 = vor.u32 %v4535_v28, %v3968_v15  ;;  %v4548_v52 = vld [vmem:[#allocation2 + $0x68c] sm:$0xf0]  ;;  %v4202_v60 = vld [vmem:[#allocation2 + $0x7e8] sm:$0xf] }
 0x219   :  { %2079 = vmatpush.bf16.msrb.mxu3 %v3879_v63  ;;  %v4019_v61 = vor.u32 %v4549_v45, %v4018_v37  ;;  %v4103_v37 = vor.u32 %v4569_v35, %v4102_v23  ;;  %v4546_v45 = vld [vmem:[#allocation2 + $0x684] sm:$0xf]  ;;  %v4593_v42 = vld [vmem:[#allocation2 + $0x7f4] sm:$0xf0]  ;;  %v4036_v28 = vld [vmem:[#allocation2 + $0x6b8] sm:$0xf0] }
 0x21a   :  { %2248 = vmatpush.bf16.msra.mxu0 %v3951_v1  ;;  %v990_v46 = vpop.f32.mrf.mxu0  ;;  %3871 = vmatmul.msk.bf16.vlgmr.msrb.gmra.mxu1 %vm350_vm6, %v4951_v38  ;;  %v4060_v38 = vld [vmem:[#allocation2 + $0x6f0] sm:$0xf0]  ;;  %v4566_v15 = vld [vmem:[#allocation2 + $0x724] sm:$0xf]  ;;  %v4170_v30 = vld [vmem:[#allocation2 + $0x7a8] sm:$0xf] }
 0x21b   :  { %2102 = vmatpush.bf16.msra.mxu1 %v3935_v8  ;;  %v4996_v53 = vadd.f32 %v990_v46, %v4976_v21  ;;  %3936 = vmatmul.msk.bf16.vlgmr.msrb.gmra.mxu2 %vm350_vm6, %v4970_v41  ;;  %v4543_v21 = vld [vmem:[#allocation2 + $0x66c] sm:$0xf]  ;;  %v4042_v8 = vld [vmem:[#allocation2 + $0x6c0] sm:$0xf]  ;;  %v4585_v23 = vld [vmem:[#allocation2 + $0x7b4] sm:$0xf0] }
 0x21c   :  { %2219 = vmatpush.bf16.msra.mxu2 %v3991_v4  ;;  %3937 = vmatmul.msk.bf16.vlgmr.msrb.gmra.mxu3 %vm350_vm6, %v4970_v41  ;;  %v4003_v4 = vor.u32 %v4543_v21, %v4000_v50  ;;  %v4010_v46 = vld [vmem:[#allocation2 + $0x680] sm:$0xf]  ;;  %v4576_v50 = vld [vmem:[#allocation2 + $0x76c] sm:$0xf0] }
 0x21d   :  { %2232 = vmatpush.bf16.msra.mxu3 %v3995_v11  ;;  %4006 = vmatmul.msk.bf16.vlgmr.msra.gmra.mxu0 %vm350_vm6, %v4840_v43  ;;  %v2289_v11 = vunpack.c.l.b16 %v4840_v43  ;;  %v4126_v21 = vld [vmem:[#allocation2 + $0x760] sm:$0xf] }
 0x21e   :  { %2405 = vmatpush.bf16.msrb.mxu0 %v4067_v12  ;;  %v808_v39 = vpop.f32.mrf.mxu2  ;;  %v4063_v12 = vor.u32 %v4558_v58, %v4060_v38  ;;  %v4068_v58 = vld [vmem:[#allocation2 + $0x6f8] sm:$0xf0] }
 0x21f   :  { %2103 = vmatpush.bf16.msra.mxu1 %v3919_v20  ;;  %v5007_v63 = vadd.f32 %v808_v39, %v4987_v32  ;;  %v821_v1 = vpop.f32.mrf.mxu3  ;;  %v692_v9 = vpop.f32.mrf.mxu1  ;;  %v4044_v32 = vld [vmem:[#allocation2 + $0x6d0] sm:$0xf0]  ;;  %v5013_v20 = vpack.c.b16 %v2289_v11, %v2289_v11 }
 0x220   :  { %2220 = vmatpush.bf16.msra.mxu2 %v3975_v25  ;;  %v5010_v6 = vadd.f32 %v821_v1, %v4990_v10  ;;  %v4043_v10 = vor.u32 %v4556_v5, %v4042_v8  ;;  %v3987_v25 = vor.u32 %v4539_v14, %v3984_v16  ;;  %v4110_v5 = vld [vmem:[#allocation2 + $0x740] sm:$0xf]  ;;  %v4572_v9 = vld [vmem:[#allocation2 + $0x74c] sm:$0xf0]  ;;  %v4203_v14 = vor.u32 %v4593_v42, %v4202_v60  ;;  %v4555_v16 = vld [vmem:[#allocation2 + $0x6cc] sm:$0xf] }
 0x221   :  { %2233 = vmatpush.bf16.msra.mxu3 %v3979_v7  ;;  %v4047_v7 = vor.u32 %v4554_v17, %v4044_v32  ;;  %v5016_v34 = vrot.slane %v5013_v20, 1  ;;  %v4052_v17 = vld [vmem:[#allocation2 + $0x6d8] sm:$0xf0] }
 0x222   :  { %2406 = vmatpush.bf16.msrb.mxu0 %v4051_v0  ;;  %v992_v36 = vpop.f32.mrf.mxu0  ;;  %v4119_v0 = vor.u32 %v4573_v18, %v4118_v2  ;;  %v4112_v2 = vld [vmem:[#allocation2 + $0x750] sm:$0xf0]  ;;  %v4589_v18 = vld [vmem:[#allocation2 + $0x7d4] sm:$0xf0] }
 0x223   :  { %2104 = vmatpush.bf16.msra.mxu1 %v3903_v47  ;;  %v4570_v36 = vld [vmem:[#allocation2 + $0x744] sm:$0xf] }
 0x224   :  { %2221 = vmatpush.bf16.msra.mxu2 %v3959_v40 }
 0x225   :  { %2234 = vmatpush.bf16.msra.mxu3 %v3963_v54  ;;  %v4531_v54 = vld [vmem:[#allocation2 + $0x60c] sm:$0xf] }
 0x226   :  { %2407 = vmatpush.bf16.msrb.mxu0 %v4035_v55  ;;  %v810_v27 = vpop.f32.mrf.mxu2  ;;  %v3952_v55 = vld [vmem:[#allocation2 + $0x618] sm:$0xf0] }
 0x227   :  { %2105 = vmatpush.bf16.msra.mxu1 %v3887_v31  ;;  %v823_v24 = vpop.f32.mrf.mxu3  ;;  %v847_v33 = vpop.f32.mrf.mxu1  ;;  %v4011_v31 = vor.u32 %v4548_v52, %v4010_v46  ;;  %v3955_v38 = vor.u32 %v4531_v54, %v3952_v55  ;;  %v4551_v27 = vld [vmem:[#allocation2 + $0x6ac] sm:$0xf]  ;;  %v4078_v52 = vld [vmem:[#allocation2 + $0x700] sm:$0xf]  ;;  %v4564_v54 = vld [vmem:[#allocation2 + $0x70c] sm:$0xf0] }
 0x228   :  { %2222 = vmatpush.bf16.msra.mxu2 %v3943_v59  ;;  %v5019_v40 = vadd.f32 %v847_v33, %v4993_v44  ;;  %v4565_v44 = vld [vmem:[#allocation2 + $0x714] sm:$0xf0]  ;;  %v4574_v59 = vld [vmem:[#allocation2 + $0x764] sm:$0xf]  ;;  %v4096_v24 = vld [vmem:[#allocation2 + $0x730] sm:$0xf0] }
 0x229   :  { %2235 = vmatpush.bf16.msra.mxu3 %v3947_v62  ;;  %v4015_v62 = vor.u32 %v4546_v45, %v4012_v56  ;;  %v5039_v33 = vrot.slane %v5013_v20, 2  ;;  %v4547_v55 = vld [vmem:[#allocation2 + $0x68c] sm:$0xf]  ;;  %v4171_v45 = vor.u32 %v4585_v23, %v4170_v30  ;;  %v4020_v56 = vld [vmem:[#allocation2 + $0x698] sm:$0xf0] }
 0x22a   :  { %2408 = vmatpush.bf16.msrb.mxu0 %v4019_v61  ;;  %v1150_v47 = vpop.f32.mrf.mxu0  ;;  %3939 = vmatmul.msk.bf16.vlgmr.msra.gmra.mxu1 %vm350_vm6, %v4970_v41  ;;  %v4128_v41 = vld [vmem:[#allocation2 + $0x770] sm:$0xf0]  ;;  %v4087_v61 = vor.u32 %v4565_v44, %v4086_v57  ;;  %v4562_v57 = vld [vmem:[#allocation2 + $0x704] sm:$0xf]  ;;  %v4580_v30 = vld [vmem:[#allocation2 + $0x78c] sm:$0xf0] }
 0x22b   :  { %2258 = vmatpush.bf16.msrb.mxu1 %v4003_v4  ;;  %v5022_v29 = vadd.f32 %v1150_v47, %v4996_v53  ;;  %4004 = vmatmul.msk.bf16.vlgmr.msra.gmra.mxu2 %vm350_vm6, %v4840_v43  ;;  %v4559_v53 = vld [vmem:[#allocation2 + $0x6ec] sm:$0xf]  ;;  %v4127_v4 = vor.u32 %v4576_v50, %v4126_v21  ;;  %v4080_v44 = vld [vmem:[#allocation2 + $0x710] sm:$0xf0]  ;;  %v4581_v21 = vld [vmem:[#allocation2 + $0x794] sm:$0xf0] }
 0x22c   :  { %2379 = vmatpush.bf16.msrb.mxu2 %v4059_v3  ;;  %4005 = vmatmul.msk.bf16.vlgmr.msra.gmra.mxu3 %vm350_vm6, %v4840_v43  ;;  %v4071_v8 = vor.u32 %v4559_v53, %v4068_v58  ;;  %v4194_v50 = vld [vmem:[#allocation2 + $0x7e0] sm:$0xf]  ;;  %v4575_v53 = vld [vmem:[#allocation2 + $0x76c] sm:$0xf]  ;;  %v4136_v58 = vld [vmem:[#allocation2 + $0x778] sm:$0xf0]  ;;  %v4083_v60 = vor.u32 %v4562_v57, %v4080_v44 }
 0x22d   :  { %2392 = vmatpush.bf16.msrb.mxu3 %v4063_v12  ;;  %4074 = vmatmul.msk.bf16.vlgmr.msrb.gmra.mxu0 %vm350_vm6, %v5016_v34  ;;  %v4587_v57 = vld [vmem:[#allocation2 + $0x7cc] sm:$0xf]  ;;  %v4188_v44 = vld [vmem:[#allocation2 + $0x7d8] sm:$0xf0] }
 0x22e   :  { %2562 = vmatpush.bf16.msra.mxu0 %v4135_v13  ;;  %v964_v39 = vpop.f32.mrf.mxu2  ;;  %v4131_v13 = vor.u32 %v4574_v59, %v4128_v41  ;;  %v4079_v59 = vor.u32 %v4564_v54, %v4078_v52  ;;  %v4591_v52 = vld [vmem:[#allocation2 + $0x7ec] sm:$0xf] }
 0x22f   :  { %2259 = vmatpush.bf16.msrb.mxu1 %v3987_v25  ;;  %v5033_v1 = vadd.f32 %v964_v39, %v5007_v63  ;;  %v977_v3 = vpop.f32.mrf.mxu3  ;;  %v849_v12 = vpop.f32.mrf.mxu1  ;;  %v4186_v63 = vld [vmem:[#allocation2 + $0x7c8] sm:$0xf]  ;;  %v4055_v25 = vor.u32 %v4555_v16, %v4052_v17  ;;  %v4586_v17 = vld [vmem:[#allocation2 + $0x7c4] sm:$0xf] }
 0x230   :  { %2380 = vmatpush.bf16.msrb.mxu2 %v4043_v10  ;;  %v5036_v11 = vadd.f32 %v977_v3, %v5010_v6  ;;  %v4111_v10 = vor.u32 %v4572_v9, %v4110_v5  ;;  %v4115_v6 = vor.u32 %v4570_v36, %v4112_v2  ;;  %v4139_v3 = vor.u32 %v4575_v53, %v4136_v58  ;;  %v4588_v12 = vld [vmem:[#allocation2 + $0x7cc] sm:$0xf0]  ;;  %v4180_v36 = vld [vmem:[#allocation2 + $0x7d0] sm:$0xf0]  ;;  %v4583_v53 = vld [vmem:[#allocation2 + $0x7ac] sm:$0xf] }
 0x231   :  { %2393 = vmatpush.bf16.msrb.mxu3 %v4047_v7  ;;  %v4187_v7 = vor.u32 %v4589_v18, %v4186_v63  ;;  %v4183_v2 = vor.u32 %v4586_v17, %v4180_v36  ;;  %v4162_v63 = vld [vmem:[#allocation2 + $0x7a0] sm:$0xf]  ;;  %v4584_v18 = vld [vmem:[#allocation2 + $0x7ac] sm:$0xf0]  ;;  %v4172_v58 = vld [vmem:[#allocation2 + $0x7b8] sm:$0xf0] }
 0x232   :  { %2563 = vmatpush.bf16.msra.mxu0 %v4119_v0  ;;  %v1152_v32 = vpop.f32.mrf.mxu0  ;;  %v4094_v0 = vld [vmem:[#allocation2 + $0x720] sm:$0xf] }
 0x233   :  { %2260 = vmatpush.bf16.msrb.mxu1 %v3971_v51  ;;  %v4039_v51 = vor.u32 %v4551_v27, %v4036_v28 }
 0x234   :  { %2381 = vmatpush.bf16.msrb.mxu2 %v4027_v49  ;;  %v4095_v49 = vor.u32 %v4568_v22, %v4094_v0  ;;  %v4164_v0 = vld [vmem:[#allocation2 + $0x7b0] sm:$0xf0] }
 0x235   :  { %2394 = vmatpush.bf16.msrb.mxu3 %v4031_v48 }
 0x236   :  { %2564 = vmatpush.bf16.msra.mxu0 %v4103_v37  ;;  %v966_v26 = vpop.f32.mrf.mxu2  ;;  %v4099_v37 = vor.u32 %v4566_v15, %v4096_v24  ;;  %v4163_v15 = vor.u32 %v4584_v18, %v4162_v63  ;;  %v4146_v24 = vld [vmem:[#allocation2 + $0x780] sm:$0xf] }
 0x237   :  { %2261 = vmatpush.bf16.msrb.mxu1 %v3955_v38  ;;  %v979_v19 = vpop.f32.mrf.mxu3  ;;  %v1003_v35 = vpop.f32.mrf.mxu1  ;;  %v4196_v38 = vld [vmem:[#allocation2 + $0x7f0] sm:$0xf0]  ;;  %v5060_v26 = vrot.slane %v5013_v20, 3  ;;  %v4147_v54 = vor.u32 %v4580_v30, %v4146_v24 }
 0x238   :  { %2382 = vmatpush.bf16.msrb.mxu2 %v4011_v31  ;;  %v5042_v46 = vadd.f32 %v1003_v35, %v5019_v40  ;;  %v4154_v40 = vld [vmem:[#allocation2 + $0x788] sm:$0xf]  ;;  %v4023_v31 = vor.u32 %v4547_v55, %v4020_v56  ;;  %v4148_v20 = vld [vmem:[#allocation2 + $0x790] sm:$0xf0] }
 0x239   :  { %2395 = vmatpush.bf16.msrb.mxu3 %v4015_v62  ;;  %v4155_v42 = vor.u32 %v4581_v21, %v4154_v40 }
 0x23a   :  { %2565 = vmatpush.bf16.msra.mxu0 %v4087_v61  ;;  %v1307_v47 = vpop.f32.mrf.mxu0  ;;  %4007 = vmatmul.msk.bf16.vlgmr.msrb.gmra.mxu1 %vm350_vm6, %v4840_v43  ;;  %v4590_v43 = vld [vmem:[#allocation2 + $0x7e4] sm:$0xf] }
 0x23b   :  { %2418 = vmatpush.bf16.msra.mxu1 %v4071_v8  ;;  %v5045_v48 = vadd.f32 %v1307_v47, %v5022_v29  ;;  %4072 = vmatmul.msk.bf16.vlgmr.msrb.gmra.mxu2 %vm350_vm6, %v5016_v34  ;;  %v4592_v29 = vld [vmem:[#allocation2 + $0x7ec] sm:$0xf0]  ;;  %v4199_v9 = vor.u32 %v4590_v43, %v4196_v38  ;;  %v4563_v47 = vld [vmem:[#allocation2 + $0x70c] sm:$0xf] }
 0x23c   :  { %2536 = vmatpush.bf16.msra.mxu2 %v4127_v4  ;;  %4073 = vmatmul.msk.bf16.vlgmr.msrb.gmra.mxu3 %vm350_vm6, %v5016_v34  ;;  %v4195_v61 = vor.u32 %v4592_v29, %v4194_v50  ;;  %v4178_v4 = vld [vmem:[#allocation2 + $0x7c0] sm:$0xf]  ;;  %v4191_v29 = vor.u32 %v4587_v57, %v4188_v44  ;;  %v4579_v38 = vld [vmem:[#allocation2 + $0x78c] sm:$0xf] }
 0x23d   :  { %2549 = vmatpush.bf16.msra.mxu3 %v4131_v13  ;;  %4142 = vmatmul.msk.bf16.vlgmr.msra.gmra.mxu0 %vm350_vm6, %v5039_v33  ;;  %v4571_v13 = vld [vmem:[#allocation2 + $0x74c] sm:$0xf] }
 0x23e   :  { %2719 = vmatpush.bf16.msrb.mxu0 %v4203_v14  ;;  %v1124_v41 = vpop.f32.mrf.mxu2  ;;  %v4120_v14 = vld [vmem:[#allocation2 + $0x758] sm:$0xf0] }
 0x23f   :  { %2419 = vmatpush.bf16.msra.mxu1 %v4055_v25  ;;  %v5056_v39 = vadd.f32 %v1124_v41, %v5033_v1  ;;  %v1137_v62 = vpop.f32.mrf.mxu3  ;;  %v1005_v5 = vpop.f32.mrf.mxu1  ;;  %v4179_v1 = vor.u32 %v4588_v12, %v4178_v4  ;;  %v4123_v32 = vor.u32 %v4571_v13, %v4120_v14  ;;  %v4104_v25 = vld [vmem:[#allocation2 + $0x738] sm:$0xf0] }
 0x240   :  { %2537 = vmatpush.bf16.msra.mxu2 %v4111_v10  ;;  %v1168_v8 = vadd.f32 %v1137_v62, %v5036_v11  ;;  %v4567_v10 = vld [vmem:[#allocation2 + $0x72c] sm:$0xf]  ;;  %v4156_v41 = vld [vmem:[#allocation2 + $0x798] sm:$0xf0] }
 0x241   :  { %2550 = vmatpush.bf16.msra.mxu3 %v4115_v6  ;;  %v4107_v19 = vor.u32 %v4567_v10, %v4104_v25 }
 0x242   :  { %2720 = vmatpush.bf16.msrb.mxu0 %v4187_v7  ;;  %v1309_v16 = vpop.f32.mrf.mxu0  ;;  %v4582_v7 = vld [vmem:[#allocation2 + $0x7a4] sm:$0xf] }
 0x243   :  { %2420 = vmatpush.bf16.msra.mxu1 %v4039_v51  ;;  %v4167_v35 = vor.u32 %v4582_v7, %v4164_v0  ;;  %v4578_v51 = vld [vmem:[#allocation2 + $0x784] sm:$0xf] }
 0x244   :  { %2538 = vmatpush.bf16.msra.mxu2 %v4095_v49  ;;  %v4088_v49 = vld [vmem:[#allocation2 + $0x718] sm:$0xf0] }
 0x245   :  { %2551 = vmatpush.bf16.msra.mxu3 %v4099_v37  ;;  %v4091_v55 = vor.u32 %v4563_v47, %v4088_v49  ;;  %v4151_v37 = vor.u32 %v4578_v51, %v4148_v20 }
 0x246   :  { %2721 = vmatpush.bf16.msrb.mxu0 %v4171_v45  ;;  %v1126_v11 = vpop.f32.mrf.mxu2 }
 0x247   :  { %2421 = vmatpush.bf16.msra.mxu1 %v4023_v31  ;;  %v1139_v6 = vpop.f32.mrf.mxu3  ;;  %v1163_v22 = vpop.f32.mrf.mxu1  ;;  %v4175_v31 = vor.u32 %v4583_v53, %v4172_v58 }
 0x248   :  { %2539 = vmatpush.bf16.msra.mxu2 %v4079_v59  ;;  %v1170_v27 = vadd.f32 %v1163_v22, %v5042_v46  ;;  %v4204_v46 = vld [vmem:[#allocation2 + $0x7f8] sm:$0xf0] }
 0x249   :  { %2552 = vmatpush.bf16.msra.mxu3 %v4083_v60 }
 0x24a   :  { %2722 = vmatpush.bf16.msrb.mxu0 %v4155_v42  ;;  %v1464_v28 = vpop.f32.mrf.mxu0  ;;  %4075 = vmatmul.msk.bf16.vlgmr.msra.gmra.mxu1 %vm350_vm6, %v5016_v34  ;;  %v4207_v34 = vor.u32 %v4591_v52, %v4204_v46 }
 0x24b   :  { %2575 = vmatpush.bf16.msrb.mxu1 %v4139_v3  ;;  %v1483_v23 = vadd.f32 %v1464_v28, %v5045_v48  ;;  %4140 = vmatmul.msk.bf16.vlgmr.msra.gmra.mxu2 %vm350_vm6, %v5039_v33 }
 0x24c   :  { %2693 = vmatpush.bf16.msrb.mxu2 %v4195_v61  ;;  %4141 = vmatmul.msk.bf16.vlgmr.msra.gmra.mxu3 %vm350_vm6, %v5039_v33  ;;  %v4159_v61 = vor.u32 %v4579_v38, %v4156_v41  ;;  %v4601_v41 = vld [vmem:[%s5236_s8 + $0x38] sm:$0xff] }
 0x24d   :  { %2706 = vmatpush.bf16.msrb.mxu3 %v4199_v9  ;;  %4210 = vmatmul.msk.bf16.vlgmr.msrb.gmra.mxu0 %vm350_vm6, %v5060_v26 }
 0x24e   :  { %v1281_v48 = vpop.f32.mrf.mxu2 }
 0x24f   :  { %2576 = vmatpush.bf16.msrb.mxu1 %v4123_v32  ;;  %v1324_v45 = vadd.f32 %v1281_v48, %v5056_v39  ;;  %v1294_v56 = vpop.f32.mrf.mxu3  ;;  %v1165_v21 = vpop.f32.mrf.mxu1  ;;  %v4617_v48 = vld [vmem:[%s5236_s8 + $0xb8] sm:$0xff] }
 0x250   :  { %2694 = vmatpush.bf16.msrb.mxu2 %v4179_v1  ;;  %v1325_v40 = vadd.f32 %v1294_v56, %v1168_v8  ;;  %3057 = vmatpush.bf16.msra.mxu0 %v4617_v48  ;;  %v4614_v21 = vld [vmem:[%s5236_s8 + $0xa0] sm:$0xff] }
 0x251   :  { %2707 = vmatpush.bf16.msrb.mxu3 %v4183_v2 }
 0x252   :  { %v1466_v50 = vpop.f32.mrf.mxu0 }
 0x253   :  { %2577 = vmatpush.bf16.msrb.mxu1 %v4107_v19 }
 0x254   :  { %2695 = vmatpush.bf16.msrb.mxu2 %v4163_v15 }
 0x255   :  { %2708 = vmatpush.bf16.msrb.mxu3 %v4167_v35 }
 0x256   :  { %v1283_v59 = vpop.f32.mrf.mxu2 }
 0x257   :  { %2578 = vmatpush.bf16.msrb.mxu1 %v4091_v55  ;;  %v1296_v43 = vpop.f32.mrf.mxu3  ;;  %v1320_v60 = vpop.f32.mrf.mxu1  ;;  %v4613_v59 = vld [vmem:[%s5236_s8 + $0x98] sm:$0xff] }
 0x258   :  { %2696 = vmatpush.bf16.msrb.mxu2 %v4147_v54  ;;  %v1327_v42 = vadd.f32 %v1320_v60, %v1170_v27  ;;  %v4609_v60 = vld [vmem:[%s5236_s8 + $0x78] sm:$0xff] }
 0x259   :  { %2709 = vmatpush.bf16.msrb.mxu3 %v4151_v37  ;;  %v4616_v37 = vld [vmem:[%s5236_s8 + $0xb0] sm:$0xff] }
 0x25a   :  { %v1620_v39 = vpop.f32.mrf.mxu0  ;;  %4143 = vmatmul.msk.bf16.vlgmr.msrb.gmra.mxu1 %vm350_vm6, %v5039_v33  ;;  %3058 = vmatpush.bf16.msra.mxu0 %v4616_v37 }
 0x25b   :  { %2732 = vmatpush.bf16.msra.mxu1 %v4207_v34  ;;  %v1639_v62 = vadd.f32 %v1620_v39, %v1483_v23  ;;  %4208 = vmatmul.msk.bf16.vlgmr.msrb.gmra.mxu2 %vm350_vm6, %v5060_v26 }
 0x25c   :  { %4209 = vmatmul.msk.bf16.vlgmr.msrb.gmra.mxu3 %vm350_vm6, %v5060_v26  ;;  %3031 = vmatpush.bf16.msra.mxu2 %v4601_v41 }
 0x25d   :  { %3044 = vmatpush.bf16.msra.mxu3 %v4609_v60 }
 0x25e   :  { %v1438_v3 = vpop.f32.mrf.mxu2 }
 0x25f   :  { %2733 = vmatpush.bf16.msra.mxu1 %v4191_v29  ;;  %v1481_v4 = vadd.f32 %v1438_v3, %v1324_v45  ;;  %v1451_v8 = vpop.f32.mrf.mxu3  ;;  %v1322_v9 = vpop.f32.mrf.mxu1  ;;  %v4608_v3 = vld [vmem:[%s5236_s8 + $0x70] sm:$0xff] }
 0x260   :  { %v1482_v5 = vadd.f32 %v1451_v8, %v1325_v40  ;;  %v4615_v40 = vld [vmem:[%s5236_s8 + $0xa8] sm:$0xff]  ;;  %v2829_v8 = vld [vmem:[%s5236_s8 + $0xf8] sm:$0x3] }
 0x261   :  { %3059 = vmatpush.bf16.msra.mxu0 %v4615_v40  ;;  %3045 = vmatpush.bf16.msra.mxu3 %v4608_v3  ;;  %v2959_v9 = vunpack.c.l.b16 %v2829_v8 }
 0x262   :  { %v1622_v12 = vpop.f32.mrf.mxu0 }
 0x263   :  { %2734 = vmatpush.bf16.msra.mxu1 %v4175_v31  ;;  %v4612_v31 = vld [vmem:[%s5236_s8 + $0x90] sm:$0xff] }
 0x265   :  { %3060 = vmatpush.bf16.msra.mxu0 %v4614_v21 }
 0x266   :  { %v1440_v13 = vpop.f32.mrf.mxu2 }
 0x267   :  { %2735 = vmatpush.bf16.msra.mxu1 %v4159_v61  ;;  %v1453_v14 = vpop.f32.mrf.mxu3  ;;  %v1477_v16 = vpop.f32.mrf.mxu1  ;;  %v4600_v61 = vld [vmem:[%s5236_s8 + $0x30] sm:$0xff]  ;;  %v4599_v13 = vld [vmem:[%s5236_s8 + $0x28] sm:$0xff] }
 0x268   :  { %v1484_v17 = vadd.f32 %v1477_v16, %v1327_v42  ;;  %3032 = vmatpush.bf16.msra.mxu2 %v4600_v61  ;;  %v4607_v14 = vld [vmem:[%s5236_s8 + $0x68] sm:$0xff] }
 0x269   :  { %3061 = vmatpush.bf16.msra.mxu0 %v4613_v59  ;;  %3046 = vmatpush.bf16.msra.mxu3 %v4607_v14 }
 0x26a   :  { %v1780_v36 = vpop.f32.mrf.mxu0  ;;  %4211 = vmatmul.msk.bf16.vlgmr.msra.gmra.mxu1 %vm350_vm6, %v5060_v26 }
 0x26b   :  { %v1799_v1 = vadd.f32 %v1780_v36, %v1639_v62  ;;  %v4611_v62 = vld [vmem:[%s5236_s8 + $0x88] sm:$0xff] }
 0x26c   :  { %3033 = vmatpush.bf16.msra.mxu2 %v4599_v13 }
 0x26d   :  { %3062 = vmatpush.bf16.msra.mxu0 %v4612_v31 }
 0x26e   :  { %v1594_v33 = vpop.f32.mrf.mxu2 }
 0x26f   :  { %v1637_v32 = vadd.f32 %v1594_v33, %v1481_v4  ;;  %v1607_v2 = vpop.f32.mrf.mxu3  ;;  %v1479_v11 = vpop.f32.mrf.mxu1  ;;  %v4610_v4 = vld [vmem:[%s5236_s8 + $0x80] sm:$0xff] }
 0x270   :  { %v1638_v63 = vadd.f32 %v1607_v2, %v1482_v5  ;;  %v4598_v33 = vld [vmem:[%s5236_s8 + $0x20] sm:$0xff]  ;;  %v4624_v2 = vld [vmem:[%s5236_s8 + $0xf0] sm:$0xff] }
 0x271   :  { %3063 = vmatpush.bf16.msra.mxu0 %v4611_v62  ;;  %3034 = vmatpush.bf16.msra.mxu2 %v4598_v33 }
 0x272   :  { %v1782_v18 = vpop.f32.mrf.mxu0 }
 0x273   :  { %v4597_v18 = vld [vmem:[%s5236_s8 + $0x18] sm:$0xff] }
 0x275   :  { %3064 = vmatpush.bf16.msra.mxu0 %v4610_v4  ;;  %3035 = vmatpush.bf16.msra.mxu2 %v4597_v18 }
 0x276   :  { %v1596_v10 = vpop.f32.mrf.mxu2 }
 0x277   :  { %v1609_v25 = vpop.f32.mrf.mxu3  ;;  %v1633_v6 = vpop.f32.mrf.mxu1  ;;  %v4605_v10 = vld [vmem:[%s5236_s8 + $0x58] sm:$0xff] }
 0x278   :  { %v1640_v7 = vadd.f32 %v1633_v6, %v1484_v17  ;;  %v2991_v17 = vpack.c.b16 %v2959_v9, %v2959_v9 }
 0x27a   :  { %v1937_v0 = vpop.f32.mrf.mxu0 }
 0x27b   :  { %v5081_v22 = vadd.f32 %v1937_v0, %v1799_v1  ;;  %v3029_v1 = vsel %vm3027_vm7, %v2991_v17, 0  ;;  %v4596_v0 = vld [vmem:[%s5236_s8 + $0x10] sm:$0xff] }
 0x27c   :  { %3070 = vmatpush.bf16.msrb.mxu1 %v3029_v1  ;;  %3036 = vmatpush.bf16.msra.mxu2 %v4596_v0 }
 0x27e   :  { %v1754_v27 = vpop.f32.mrf.mxu2 }
 0x27f   :  { %v1797_v28 = vadd.f32 %v1754_v27, %v1637_v32  ;;  %v1767_v15 = vpop.f32.mrf.mxu3  ;;  %v1635_v24 = vpop.f32.mrf.mxu1  ;;  %v4606_v32 = vld [vmem:[%s5236_s8 + $0x60] sm:$0xff]  ;;  %v4604_v27 = vld [vmem:[%s5236_s8 + $0x50] sm:$0xff] }
 0x280   :  { %v1798_v19 = vadd.f32 %v1767_v15, %v1638_v63  ;;  %3047 = vmatpush.bf16.msra.mxu3 %v4606_v32  ;;  %3071 = vmatpush.bf16.msrb.mxu1 %v4624_v2  ;;  %v4595_v24 = vld [vmem:[%s5236_s8 + $0x8] sm:$0xff] }
 0x281   :  { %3037 = vmatpush.bf16.msra.mxu2 %v4595_v24 }
 0x282   :  { %v1939_v30 = vpop.f32.mrf.mxu0 }
 0x283   :  { %v4603_v30 = vld [vmem:[%s5236_s8 + $0x48] sm:$0xff] }
 0x284   :  { %3048 = vmatpush.bf16.msra.mxu3 %v4605_v10 }
 0x286   :  { %v1756_v26 = vpop.f32.mrf.mxu2 }
 0x287   :  { %v1769_v23 = vpop.f32.mrf.mxu3  ;;  %v1793_v35 = vpop.f32.mrf.mxu1 }
 0x288   :  { %v1800_v47 = vadd.f32 %v1793_v35, %v1640_v7  ;;  %v4623_v7 = vld [vmem:[%s5236_s8 + $0xe8] sm:$0xff]  ;;  %3049 = vmatpush.bf16.msra.mxu3 %v4604_v27  ;;  %v4621_v35 = vld [vmem:[%s5236_s8 + $0xd8] sm:$0xff] }
 0x289   :  { %3072 = vmatpush.bf16.msrb.mxu1 %v4623_v7 }
 0x28a   :  { %v5083_v49 = vpop.f32.mrf.mxu0 }
 0x28c   :  { %3050 = vmatpush.bf16.msra.mxu3 %v4603_v30 }
 0x28e   :  { %v1911_v51 = vpop.f32.mrf.mxu2 }
 0x28f   :  { %v5085_v20 = vadd.f32 %v1911_v51, %v1797_v28  ;;  %v1924_v52 = vpop.f32.mrf.mxu3  ;;  %v1795_v54 = vpop.f32.mrf.mxu1  ;;  %v4622_v28 = vld [vmem:[%s5236_s8 + $0xe0] sm:$0xff] }
 0x290   :  { %v5087_v46 = vadd.f32 %v1924_v52, %v1798_v19  ;;  %3073 = vmatpush.bf16.msrb.mxu1 %v4622_v28  ;;  %v4594_v51 = vld [vmem:[%s5236_s8] sm:$0xff] }
 0x291   :  { %v4602_v52 = vld [vmem:[%s5236_s8 + $0x40] sm:$0xff]  ;;  %3038 = vmatpush.bf16.msra.mxu2 %v4594_v51 }
 0x292   :  { %v2096_v55 = vpop.f32.mrf.mxu0  ;;  %3051 = vmatpush.bf16.msra.mxu3 %v4602_v52 }
 0x293   :  { %v2745_v55 = vld [vmem:[%s5235_s7] sm:$0xf] }
 0x294   :  { %3074 = vmatpush.bf16.msrb.mxu1 %v4621_v35  ;;  %v2747_v17 = vperm.slane %v2745_v55, 0  ;;  %v2748_v33 = vperm.slane %v2745_v55, 1  ;;  %v2750_v28 = vperm.slane %v2745_v55, 3 }
 0x296   :  { %v1913_v34 = vpop.f32.mrf.mxu2 }
 0x297   :  { %v1926_v45 = vpop.f32.mrf.mxu3  ;;  %v1950_v56 = vpop.f32.mrf.mxu1 }
 0x298   :  { %v5095_v57 = vadd.f32 %v1950_v56, %v1800_v47  ;;  %v2113_v47 = vadd.f32 %v5083_v49, %v5081_v22  ;;  %v4620_v22 = vld [vmem:[%s5236_s8 + $0xd0] sm:$0xff]  ;;  %v2749_v56 = vperm.slane %v2745_v55, 2 }
 0x299   :  { %3075 = vmatpush.bf16.msrb.mxu1 %v4620_v22 }
 0x29a   :  { %v5097_v44 = vpop.f32.mrf.mxu0 }
 0x29b   :  { %v2269_v54 = vadd.f32 %v5097_v44, %v2113_v47  ;;  %v4619_v44 = vld [vmem:[%s5236_s8 + $0xc8] sm:$0xff] }
 0x29d   :  { %3076 = vmatpush.bf16.msrb.mxu1 %v4619_v44 }
 0x29e   :  { %v5105_v50 = vpop.f32.mrf.mxu2 }
 0x29f   :  { %v5107_v29 = vpop.f32.mrf.mxu3  ;;  %v1952_v53 = vpop.f32.mrf.mxu1  ;;  %v2111_v62 = vadd.f32 %v5105_v50, %v5085_v20 }
 0x2a0   :  { %v2112_v3 = vadd.f32 %v5107_v29, %v5087_v46 }
 0x2a2   :  { %v2252_v58 = vpop.f32.mrf.mxu0 }
 0x2a3   :  { %v4618_v58 = vld [vmem:[%s5236_s8 + $0xc0] sm:$0xff] }
 0x2a4   :  { %3077 = vmatpush.bf16.msrb.mxu1 %v4618_v58 }
 0x2a6   :  { %v2070_v43 = vpop.f32.mrf.mxu2 }
 0x2a7   :  { %v2083_v38 = vpop.f32.mrf.mxu3  ;;  %v5121_v42 = vpop.f32.mrf.mxu1 }
 0x2a8   :  { %v2114_v50 = vadd.f32 %v5121_v42, %v5095_v57 }
 0x2aa   :  { %v5123_v39 = vpop.f32.mrf.mxu0 }
 0x2ab   :  { %v2429_v49 = vadd.f32 %v5123_v39, %v2269_v54 }
 0x2ae   :  { %v5140_v5 = vpop.f32.mrf.mxu2 }
 0x2af   :  { %v5142_v12 = vpop.f32.mrf.mxu3  ;;  %v2109_v16 = vpop.f32.mrf.mxu1  ;;  %v2267_v8 = vadd.f32 %v5140_v5, %v2111_v62 }
 0x2b0   :  { %v2268_v9 = vadd.f32 %v5142_v12, %v2112_v3 }
 0x2b2   :  { %v2412_v36 = vpop.f32.mrf.mxu0 }
 0x2b6   :  { %v2226_v63 = vpop.f32.mrf.mxu2 }
 0x2b7   :  { %v2239_v11 = vpop.f32.mrf.mxu3  ;;  %v5165_v25 = vpop.f32.mrf.mxu1 }
 0x2b8   :  { %v2270_v5 = vadd.f32 %v5165_v25, %v2114_v50 }
 0x2ba   :  { %v2567_v6 = vpop.f32.mrf.mxu0 }
 0x2bb   :  { %v2586_v34 = vadd.f32 %v2567_v6, %v2429_v49 }
 0x2be   :  { %v2384_v15 = vpop.f32.mrf.mxu2 }
 0x2bf   :  { %v2397_v19 = vpop.f32.mrf.mxu3  ;;  %v2265_v26 = vpop.f32.mrf.mxu1  ;;  %v2427_v13 = vadd.f32 %v2384_v15, %v2267_v8 }
 0x2c0   :  { %v2428_v14 = vadd.f32 %v2397_v19, %v2268_v9 }
 0x2c2   :  { %v2569_v23 = vpop.f32.mrf.mxu0 }
 0x2c3   :  { %v4638_v23 = vld [vmem:[%s5237_s9] ss:$0 sm:$0xff]  ;;  %s4698_s9 = smov [#allocation4]  }
 0x2c4   :  { %s3102_s12 = sshll.u32 %s4698_s9, 4  ;;  %s3103_s12 = int_to_ptr.vmem [resolvable:$true] %s3102_s12 }
 0x2c6   :  { %v2386_v48 = vpop.f32.mrf.mxu2 }
 0x2c7   :  { %v2399_v37 = vpop.f32.mrf.mxu3  ;;  %v2423_v45 = vpop.f32.mrf.mxu1 }
 0x2c8   :  { %v2430_v18 = vadd.f32 %v2423_v45, %v2270_v5 }
 0x2ca   :  { %v2724_v40 = vpop.f32.mrf.mxu0 }
 0x2cb   :  { %v2743_v21 = vadd.f32 %v2724_v40, %v2586_v34 }
 0x2cd   :  { %v2757_v53 = vadd.f32 %v2749_v56, %v2743_v21 }
 0x2ce   :  { %v2541_v31 = vpop.f32.mrf.mxu2 }
 0x2cf   :  { %v2761_v59 = vmax.f32 %v2757_v53, 0.0  ;;  %v2554_v43 = vpop.f32.mrf.mxu3  ;;  %v2425_v41 = vpop.f32.mrf.mxu1  ;;  %v2584_v16 = vadd.f32 %v2541_v31, %v2427_v13 }
 0x2d0   :  { %v2585_v36 = vadd.f32 %v2554_v43, %v2428_v14 }
 0x2d1   :  { %v2765_v38 = vpack.c.bf16 %v2761_v59, %v2761_v59 }
 0x2d2   :  { %v2726_v60 = vpop.f32.mrf.mxu0 }
 0x2d3   :  { %3065 = vmatmul.bf16.vlgmr.msra.gmra.mxu0 %v2765_v38 }
 0x2d6   :  { %v2543_v39 = vpop.f32.mrf.mxu2 }
 0x2d7   :  { %v2556_v61 = vpop.f32.mrf.mxu3  ;;  %v2580_v4 = vpop.f32.mrf.mxu1 }
 0x2d8   :  { %v2587_v0 = vadd.f32 %v2580_v4, %v2430_v18 }
 0x2de   :  { %v2698_v1 = vpop.f32.mrf.mxu2 }
 0x2df   :  { %v2741_v32 = vadd.f32 %v2698_v1, %v2584_v16  ;;  %v2711_v2 = vpop.f32.mrf.mxu3  ;;  %v2582_v20 = vpop.f32.mrf.mxu1 }
 0x2e0   :  { %v2742_v63 = vadd.f32 %v2711_v2, %v2585_v36 }
 0x2e1   :  { %v2755_v46 = vadd.f32 %v2747_v17, %v2741_v32 }
 0x2e2   :  { %v2756_v29 = vadd.f32 %v2748_v33, %v2742_v63 }
 0x2e3   :  { %v2759_v11 = vmax.f32 %v2755_v46, 0.0 }
 0x2e4   :  { %v2760_v12 = vmax.f32 %v2756_v29, 0.0 }
 0x2e5   :  { %v2763_v10 = vpack.c.bf16 %v2759_v11, %v2759_v11 }
 0x2e6   :  { %v2764_v6 = vpack.c.bf16 %v2760_v12, %v2760_v12  ;;  %v2700_v7 = vpop.f32.mrf.mxu2 }
 0x2e7   :  { %v2713_v27 = vpop.f32.mrf.mxu3  ;;  %3039 = vmatmul.bf16.vlgmr.msra.gmra.mxu2 %v2763_v10  ;;  %v2737_v15 = vpop.f32.mrf.mxu1 }
 0x2e8   :  { %3052 = vmatmul.bf16.vlgmr.msra.gmra.mxu3 %v2764_v6  ;;  %v2744_v19 = vadd.f32 %v2737_v15, %v2587_v0 }
 0x2ea   :  { %v2758_v24 = vadd.f32 %v2750_v28, %v2744_v19 }
 0x2ec   :  { %v2762_v30 = vmax.f32 %v2758_v24, 0.0 }
 0x2ee   :  { %v2766_v57 = vpack.c.bf16 %v2762_v30, %v2762_v30 }
 0x2ef   :  { %v2739_v42 = vpop.f32.mrf.mxu1 }
 0x2f0   :  { %4336 = vmatmul.msk.bf16.vlgmr.msrb.gmra.mxu1 %vm3023_vm8, %v2766_v57 }
 0x350   :  { %v3066_v25 = vpop.f32.mrf.mxu0 }
 0x358   :  { %v3068_v26 = vpop.f32.mrf.mxu0 }
 0x36a   :  { %v3040_v35 = vpop.f32.mrf.mxu2 }
 0x36b   :  { %v3041_v47 = vadd.f32 %v4638_v23, %v3040_v35  ;;  %v3053_v51 = vpop.f32.mrf.mxu3 }
 0x36d   :  { %v3054_v52 = vadd.f32 %v3053_v51, %v3041_v47  ;;  %v3079_v54 = vpop.f32.mrf.mxu1 }
 0x36f   :  { %v3067_v55 = vadd.f32 %v3066_v25, %v3054_v52 }
 0x371   :  { %v3080_v22 = vadd.f32 %v3079_v54, %v3067_v55 }
 0x372   :  { %v3042_v49 = vpop.f32.mrf.mxu2 }
 0x373   :  { %v3055_v48 = vpop.f32.mrf.mxu3  ;;  %v3084_v37 = vsel %vm3083_vm9, %v3080_v22, -inf }
 0x374   :  { %3085 = vmax.xlane.f32.xlu0 %v3084_v37 }
 0x375   :  { %v3081_v34 = vpop.f32.mrf.mxu1 }
 0x3e7   :  { %v3086_v45 = vpop.xlane.xlu0 %3085 }
 0x3e8   :  { %v3087_v56 = vsub.f32 %v3080_v22, %v3086_v45 }
 0x3ea   :  { %v3088_v40 = vmul.f32 1.442695, %v3087_v56 }
 0x3ec   :  { %4639 = vpow2.f32 %v3088_v40 }
 0x3f2   :  { %v4640_v44 = vpop.eup %4639 }
 0x3f3   :  { %v3090_v21 = vsel %vm3083_vm9, %v4640_v44, 0.0 }
 0x3f4   :  { %3091 = vadd.xlane.f32.xlu0 %v3090_v21 }
 0x467   :  { %v3092_v53 = vpop.xlane.xlu0 %3091 }
 0x468   :  { %4641 = vlog2.f32 %v3092_v53 }
 0x46e   :  { %v4642_v58 = vpop.eup %4641 }
 0x46f   :  { %v3094_v59 = vmul.f32 0.6931472, %v4642_v58 }
 0x471   :  { %v3095_v31 = vsub.f32 %v3087_v56, %v3094_v59 }
 0x473   :  { %3096 = vst.msk [vmem:[#allocation4] sm:$0x3] %vm3083_vm9, %v3095_v31 }
 0x474   :  { %3107 = dma.vmem_to_hbm [thread:$0]  %s3103_s12, 32, %s3105_s14, [#allocation5]  }
 0x475   :  { %4693 = dma.done.wait [#allocation5], 32  }
 0x476   :  { %4694 = vsyncadd [#allocation5], 4294967264 }
 0x477   :  { %3112 = vsyncpa [#allocation5], 1 }
 0x478   :  { %3113 = vsyncmov [#allocation3] }
 0x47b   :  { %s3114_s1 = vpop.sfrf %3113 }
 0x47c   :  { %p4337_p0 = scmp.ne.s32.totalorder %s3114_s1, 0 }
 0x47e   :  { %3118 = shalt.err (%p4337_p0)  }

</bundles_post_ra>
